<compile_context>
chip_gen: v7x
topology: tpu7x:2x2x1
jax: 0.10.0
libtpu: 0.0.40
codegen_flags: <defaults>
</compile_context>

<pallas_src>
import functools

import jax
import jax.numpy as jnp
from jax.experimental import pallas as pl
from jax.experimental.pallas import tpu as pltpu

# ---------------- configuration ----------------
FIN_DIM = 24        # inf flattened feature dim (and encoder/decoder out dim)
PFIN_DIM = 8        # inpf feature dim
VIEW_DIM = 3        # view direction dim (no embedding: use_pencoding[1]=False)
MULTIRES = 2        # positional embedding freqs for inp
IN_DIM = 3          # raw position dim
EMB_DIM = IN_DIM * (1 + 2 * MULTIRES)          # 3 + 3*2*2 = 15
EN_HID = 32
DE_HID = 32
CDE_HID = 16
ENC_IN = EMB_DIM + PFIN_DIM + FIN_DIM          # cat([emb(inp), inpf, inf]) = 47
DEC_IN = FIN_DIM + FIN_DIM                     # cat([oute, inf]) = 48
CDE_IN = FIN_DIM + VIEW_DIM                    # cat([outd, view_direction]) = 27
INTER_WEIGHT = 1.0

TP = 512            # points per grid step (lane axis)
P_TOTAL = 1024      # total number of points in the example (>= 2 grid steps)

FREQ_BANDS = tuple(float(2.0 ** i) for i in range(MULTIRES))   # log-sampled: [1, 2]

# packed-input row layout (transposed [D, P] slab; 8-aligned offsets so the
# static sublane slices never cross an (8,128) tile boundary)
X_OFF = 0                       # rows 0..2   : inp (3)
PF_OFF = 8                      # rows 8..15  : inpf (8)
INF_OFF = 16                    # rows 16..39 : inf (24)
VIEW_OFF = 40                   # rows 40..42 : view (3)
PACK_ROWS = 48                  # padded to a multiple of 8


# ---------------- Pallas kernel ----------------
def color_net_kernel(xpk_ref,
                     we_x_ref, we_s0_ref, we_c0_ref, we_s1_ref, we_c1_ref,
                     we_pf_ref, we_inf_ref, be0_ref, we1_ref, be1_ref,
                     wd_e_ref, wd_f_ref, bd0_ref, wd1_ref, bd1_ref,
                     wc_d_ref, wc_v_ref, bc0_ref, wc1_ref, bc1_ref,
                     out_ref, *, freqs):
    # tile-aligned static slices of the packed [PACK_ROWS, TP] input slab
    x    = xpk_ref[pl.ds(X_OFF, IN_DIM), :]        # [3,  TP]
    inpf = xpk_ref[pl.ds(PF_OFF, PFIN_DIM), :]     # [8,  TP]  (inter_weight folded into weight)
    inf  = xpk_ref[pl.ds(INF_OFF, FIN_DIM), :]     # [24, TP]
    view = xpk_ref[pl.ds(VIEW_OFF, VIEW_DIM), :]   # [3,  TP]

    def mm(w_ref, a):
        return jnp.dot(w_ref[...], a, preferred_element_type=jnp.float32)

    # ---- encoder layer 0, K-split (no concat):
    # relu(cat([x, sin(f0 x), cos(f0 x), sin(f1 x), cos(f1 x), inpf, inf]) @ We0 + be0)
    h = mm(we_x_ref, x) + be0_ref[...]                               # [32, TP]
    for ws_ref, wc_ref, f in ((we_s0_ref, we_c0_ref, freqs[0]),
                              (we_s1_ref, we_c1_ref, freqs[1])):
        xf = x * f
        h = h + mm(ws_ref, jnp.sin(xf)) + mm(wc_ref, jnp.cos(xf))
    h = h + mm(we_pf_ref, inpf) + mm(we_inf_ref, inf)
    h = jnp.maximum(h, 0.0)
    oute = mm(we1_ref, h) + be1_ref[...]                             # [24, TP]

    # ---- decoder, K-split (no concat of [oute, inf])
    h = mm(wd_e_ref, oute) + mm(wd_f_ref, inf) + bd0_ref[...]        # [32, TP]
    h = jnp.maximum(h, 0.0)
    outd = mm(wd1_ref, h) + bd1_ref[...]                             # [24, TP]

    # ---- color decoder, K-split (no concat of [outd, view])
    h = mm(wc_d_ref, outd) + mm(wc_v_ref, view) + bc0_ref[...]       # [16, TP]
    h = jnp.maximum(h, 0.0)
    outc = mm(wc1_ref, h) + bc1_ref[...]                             # [3, TP]

    out_ref[...] = outc.astype(out_ref.dtype)                        # lane-dense store


# ---------------- wrapper ----------------
def prepare_kernel_params(params, inter_weight=1.0):
    """Split / transpose the nn.Linear weights for the [D, P] kernel layout.

    Weights arrive as (W [d_in, d_out], b [1, d_out]) pairs; the kernel consumes
    W_block.T of shape [d_out, k_i] per input block and biases as [d_out, 1]."""
    (we0, be0, we1, be1, wd0, bd0, wd1, bd1, wc0, bc0, wc1, bc1) = params

    def col(b):                       # [1, N] -> [N, 1]
        return b.reshape(-1, 1)

    def ksplit(w, sizes):             # w: [K, N] -> list of [N, k_i]
        out, off = [], 0
        for s in sizes:
            out.append(w[off:off + s, :].T)
            off += s
        assert off == w.shape[0]
        return out

    # encoder layer 0 K layout: [x(3), sin f0(3), cos f0(3), sin f1(3), cos f1(3), inpf(8), inf(24)]
    enc_sizes = [IN_DIM] * (1 + 2 * MULTIRES) + [PFIN_DIM, FIN_DIM]
    we_x, we_s0, we_c0, we_s1, we_c1, we_pf, we_inf = ksplit(we0, enc_sizes)
    we_pf = we_pf * inter_weight      # fold `inpf * inter_weight` into the weight
    wd_e, wd_f = ksplit(wd0, [FIN_DIM, FIN_DIM])
    wc_d, wc_v = ksplit(wc0, [FIN_DIM, VIEW_DIM])

    return (we_x, we_s0, we_c0, we_s1, we_c1, we_pf, we_inf, col(be0),
            we1.T, col(be1),
            wd_e, wd_f, col(bd0), wd1.T, col(bd1),
            wc_d, wc_v, col(bc0), wc1.T, col(bc1))


def color_net_forward(inp, inf, inpf, view_direction, params,
                      inter_weight=INTER_WEIGHT, tp=TP):
    p_num = inp.shape[0]
    assert p_num % tp == 0, "p_num must be a multiple of the point tile"

    # pack the four narrow point streams into ONE transposed, lane-dense slab
    # (single contiguous DMA per tile; 8-aligned row offsets).
    inf_flat = inf.reshape(p_num, -1)
    packed = jnp.zeros((PACK_ROWS, p_num), jnp.float32)
    packed = packed.at[X_OFF:X_OFF + IN_DIM].set(inp.T)
    packed = packed.at[PF_OFF:PF_OFF + PFIN_DIM].set(inpf.T)
    packed = packed.at[INF_OFF:INF_OFF + FIN_DIM].set(inf_flat.T)
    packed = packed.at[VIEW_OFF:VIEW_OFF + VIEW_DIM].set(view_direction.T)

    kparams = prepare_kernel_params(params, inter_weight)

    grid = (p_num // tp,)
    in_specs = [pl.BlockSpec((PACK_ROWS, tp), lambda i: (0, i))] + \
               [pl.BlockSpec(w.shape, lambda i: (0, 0)) for w in kparams]
    out_spec = pl.BlockSpec((3, tp), lambda i: (0, i))   # lane-dense output tile

    kernel = functools.partial(color_net_kernel, freqs=FREQ_BANDS)

    out_t = pl.pallas_call(
        kernel,
        out_shape=jax.ShapeDtypeStruct((3, p_num), jnp.float32),
        grid_spec=pltpu.PrefetchScalarGridSpec(
            num_scalar_prefetch=0,
            grid=grid,
            in_specs=in_specs,
            out_specs=out_spec,
        ),
        compiler_params=pltpu.CompilerParams(
            dimension_semantics=("parallel",)),
    )(packed, *kparams)
    return out_t.T                                       # back to [P, 3]


# ---------------- parameter construction (deterministic, xavier-like) ----------------
def make_linear(key, d_in, d_out):
    kw, _ = jax.random.split(key)
    scale = jnp.sqrt(2.0 / (d_in + d_out))               # xavier_normal gain=1
    w = jax.random.normal(kw, (d_in, d_out), jnp.float32) * scale
    b = jnp.zeros((1, d_out), jnp.float32)               # bias init 0
    return w, b


def make_params(key):
    ks = jax.random.split(key, 6)
    we0, be0 = make_linear(ks[0], ENC_IN, EN_HID)
    we1, be1 = make_linear(ks[1], EN_HID, FIN_DIM)
    wd0, bd0 = make_linear(ks[2], DEC_IN, DE_HID)
    wd1, bd1 = make_linear(ks[3], DE_HID, FIN_DIM)
    wc0, bc0 = make_linear(ks[4], CDE_IN, CDE_HID)
    wc1, bc1 = make_linear(ks[5], CDE_HID, 3)
    return (we0, be0, we1, be1, wd0, bd0, wd1, bd1, wc0, bc0, wc1, bc1)


# ---------------- pure-JAX reference (mirrors the PyTorch forward) ----------------
def ref_forward(inp, inf, inpf, view_direction, params, inter_weight=INTER_WEIGHT):
    (we0, be0, we1, be1, wd0, bd0, wd1, bd1, wc0, bc0, wc1, bc1) = params
    emb = jnp.concatenate(
        [inp] + [f(inp * fr) for fr in FREQ_BANDS for f in (jnp.sin, jnp.cos)], -1)
    inf_flat = inf.reshape(inf.shape[0], -1)
    inx = jnp.concatenate([emb, inpf * inter_weight, inf_flat], axis=1)
    h = jax.nn.relu(inx @ we0 + be0)
    oute = h @ we1 + be1
    h = jax.nn.relu(jnp.concatenate([oute, inf_flat], 1) @ wd0 + bd0)
    outd = h @ wd1 + bd1
    h = jax.nn.relu(jnp.concatenate([outd, view_direction], 1) @ wc0 + bc0)
    return h @ wc1 + bc1


if __name__ == "__main__":
    key = jax.random.PRNGKey(0)
    k_inp, k_inf, k_inpf, k_view, k_par = jax.random.split(key, 5)

    inp = jax.random.normal(k_inp, (P_TOTAL, IN_DIM), jnp.float32)
    inf = jax.random.normal(k_inf, (P_TOTAL, FIN_DIM), jnp.float32)   # already flat [P, fin_dim]
    inpf = jax.random.normal(k_inpf, (P_TOTAL, PFIN_DIM), jnp.float32)
    view = jax.random.normal(k_view, (P_TOTAL, VIEW_DIM), jnp.float32)
    view = view / jnp.linalg.norm(view, axis=-1, keepdims=True)

    params = make_params(k_par)

    out = color_net_forward(inp, inf, inpf, view, params)
    out = jax.block_until_ready(out)

    ref = ref_forward(inp, inf, inpf, view, params)
    assert out.shape == (P_TOTAL, 3)
    max_err = jnp.max(jnp.abs(out - ref))
    assert jnp.allclose(out, ref, atol=1e-4, rtol=1e-4), f"max err {max_err}"

    print("KERNEL_OK")
</pallas_src>

<mosaic_0001>
module attributes {stable_mosaic.version = 11 : i64} {
  func.func @color_net_kernel(%arg0: i32, %arg1: memref<48x512xf32, #tpu.memory_space<vmem>>, %arg2: memref<32x3xf32, #tpu.memory_space<vmem>>, %arg3: memref<32x3xf32, #tpu.memory_space<vmem>>, %arg4: memref<32x3xf32, #tpu.memory_space<vmem>>, %arg5: memref<32x3xf32, #tpu.memory_space<vmem>>, %arg6: memref<32x3xf32, #tpu.memory_space<vmem>>, %arg7: memref<32x8xf32, #tpu.memory_space<vmem>>, %arg8: memref<32x24xf32, #tpu.memory_space<vmem>>, %arg9: memref<32x1xf32, #tpu.memory_space<vmem>>, %arg10: memref<24x32xf32, #tpu.memory_space<vmem>>, %arg11: memref<24x1xf32, #tpu.memory_space<vmem>>, %arg12: memref<32x24xf32, #tpu.memory_space<vmem>>, %arg13: memref<32x24xf32, #tpu.memory_space<vmem>>, %arg14: memref<32x1xf32, #tpu.memory_space<vmem>>, %arg15: memref<24x32xf32, #tpu.memory_space<vmem>>, %arg16: memref<24x1xf32, #tpu.memory_space<vmem>>, %arg17: memref<16x24xf32, #tpu.memory_space<vmem>>, %arg18: memref<16x3xf32, #tpu.memory_space<vmem>>, %arg19: memref<16x1xf32, #tpu.memory_space<vmem>>, %arg20: memref<3x16xf32, #tpu.memory_space<vmem>>, %arg21: memref<3x1xf32, #tpu.memory_space<vmem>>, %arg22: memref<3x512xf32, #tpu.memory_space<vmem>>) attributes {dimension_semantics = [#tpu.dimension_semantics<parallel>], iteration_bounds = array<i64: 2>, scalar_prefetch = 0 : i64, scratch_operands = 0 : i64, tpu.core_type = #tpu.core_type<tc>, window_params = [{transform_indices = @transform_0, window_bounds = array<i64: 48, 512>}, {pipeline_mode = #tpu.pipeline_mode<synchronous>, transform_indices = @transform_1, window_bounds = array<i64: 32, 3>}, {pipeline_mode = #tpu.pipeline_mode<synchronous>, transform_indices = @transform_2, window_bounds = array<i64: 32, 3>}, {pipeline_mode = #tpu.pipeline_mode<synchronous>, transform_indices = @transform_3, window_bounds = array<i64: 32, 3>}, {pipeline_mode = #tpu.pipeline_mode<synchronous>, transform_indices = @transform_4, window_bounds = array<i64: 32, 3>}, {pipeline_mode = #tpu.pipeline_mode<synchronous>, transform_indices = @transform_5, window_bounds = array<i64: 32, 3>}, {pipeline_mode = #tpu.pipeline_mode<synchronous>, transform_indices = @transform_6, window_bounds = array<i64: 32, 8>}, {pipeline_mode = #tpu.pipeline_mode<synchronous>, transform_indices = @transform_7, window_bounds = array<i64: 32, 24>}, {pipeline_mode = #tpu.pipeline_mode<synchronous>, transform_indices = @transform_8, window_bounds = array<i64: 32, 1>}, {pipeline_mode = #tpu.pipeline_mode<synchronous>, transform_indices = @transform_9, window_bounds = array<i64: 24, 32>}, {pipeline_mode = #tpu.pipeline_mode<synchronous>, transform_indices = @transform_10, window_bounds = array<i64: 24, 1>}, {pipeline_mode = #tpu.pipeline_mode<synchronous>, transform_indices = @transform_11, window_bounds = array<i64: 32, 24>}, {pipeline_mode = #tpu.pipeline_mode<synchronous>, transform_indices = @transform_12, window_bounds = array<i64: 32, 24>}, {pipeline_mode = #tpu.pipeline_mode<synchronous>, transform_indices = @transform_13, window_bounds = array<i64: 32, 1>}, {pipeline_mode = #tpu.pipeline_mode<synchronous>, transform_indices = @transform_14, window_bounds = array<i64: 24, 32>}, {pipeline_mode = #tpu.pipeline_mode<synchronous>, transform_indices = @transform_15, window_bounds = array<i64: 24, 1>}, {pipeline_mode = #tpu.pipeline_mode<synchronous>, transform_indices = @transform_16, window_bounds = array<i64: 16, 24>}, {pipeline_mode = #tpu.pipeline_mode<synchronous>, transform_indices = @transform_17, window_bounds = array<i64: 16, 3>}, {pipeline_mode = #tpu.pipeline_mode<synchronous>, transform_indices = @transform_18, window_bounds = array<i64: 16, 1>}, {pipeline_mode = #tpu.pipeline_mode<synchronous>, transform_indices = @transform_19, window_bounds = array<i64: 3, 16>}, {pipeline_mode = #tpu.pipeline_mode<synchronous>, transform_indices = @transform_20, window_bounds = array<i64: 3, 1>}, {transform_indices = @transform_21, window_bounds = array<i64: 3, 512>}]} {
    %c0 = arith.constant 0 : index
    %c0_0 = arith.constant 0 : index
    %0 = vector.load %arg1[%c0, %c0_0] : memref<48x512xf32, #tpu.memory_space<vmem>>, vector<3x512xf32>
    %c8 = arith.constant 8 : index
    %c0_1 = arith.constant 0 : index
    %1 = vector.load %arg1[%c8, %c0_1] : memref<48x512xf32, #tpu.memory_space<vmem>>, vector<8x512xf32>
    %c16 = arith.constant 16 : index
    %c0_2 = arith.constant 0 : index
    %2 = vector.load %arg1[%c16, %c0_2] : memref<48x512xf32, #tpu.memory_space<vmem>>, vector<24x512xf32>
    %c40 = arith.constant 40 : index
    %c0_3 = arith.constant 0 : index
    %3 = vector.load %arg1[%c40, %c0_3] : memref<48x512xf32, #tpu.memory_space<vmem>>, vector<3x512xf32>
    %c0_4 = arith.constant 0 : index
    %c0_5 = arith.constant 0 : index
    %4 = vector.load %arg2[%c0_4, %c0_5] : memref<32x3xf32, #tpu.memory_space<vmem>>, vector<32x3xf32>
    %cst = arith.constant dense<0.000000e+00> : vector<32x512xf32>
    %5 = tpu.matmul %4, %0, %cst {dimension_numbers = #tpu.dot_dimension_numbers<[1], [0], [0], [1], [0, 0, 1, 1], [], []>} : vector<32x3xf32>, vector<3x512xf32>, vector<32x512xf32> -> vector<32x512xf32>
    %c0_6 = arith.constant 0 : index
    %c0_7 = arith.constant 0 : index
    %6 = vector.load %arg9[%c0_6, %c0_7] : memref<32x1xf32, #tpu.memory_space<vmem>>, vector<32x1xf32>
    %7 = vector.broadcast %6 : vector<32x1xf32> to vector<32x512xf32>
    %8 = arith.addf %5, %7 : vector<32x512xf32>
    %cst_8 = arith.constant 1.000000e+00 : f32
    %9 = vector.broadcast %cst_8 : f32 to vector<3x512xf32>
    %10 = arith.mulf %0, %9 : vector<3x512xf32>
    %11 = math.sin %10 : vector<3x512xf32>
    %c0_9 = arith.constant 0 : index
    %c0_10 = arith.constant 0 : index
    %12 = vector.load %arg3[%c0_9, %c0_10] : memref<32x3xf32, #tpu.memory_space<vmem>>, vector<32x3xf32>
    %cst_11 = arith.constant dense<0.000000e+00> : vector<32x512xf32>
    %13 = tpu.matmul %12, %11, %cst_11 {dimension_numbers = #tpu.dot_dimension_numbers<[1], [0], [0], [1], [0, 0, 1, 1], [], []>} : vector<32x3xf32>, vector<3x512xf32>, vector<32x512xf32> -> vector<32x512xf32>
    %14 = arith.addf %8, %13 : vector<32x512xf32>
    %15 = math.cos %10 : vector<3x512xf32>
    %c0_12 = arith.constant 0 : index
    %c0_13 = arith.constant 0 : index
    %16 = vector.load %arg4[%c0_12, %c0_13] : memref<32x3xf32, #tpu.memory_space<vmem>>, vector<32x3xf32>
    %cst_14 = arith.constant dense<0.000000e+00> : vector<32x512xf32>
    %17 = tpu.matmul %16, %15, %cst_14 {dimension_numbers = #tpu.dot_dimension_numbers<[1], [0], [0], [1], [0, 0, 1, 1], [], []>} : vector<32x3xf32>, vector<3x512xf32>, vector<32x512xf32> -> vector<32x512xf32>
    %18 = arith.addf %14, %17 : vector<32x512xf32>
    %cst_15 = arith.constant 2.000000e+00 : f32
    %19 = vector.broadcast %cst_15 : f32 to vector<3x512xf32>
    %20 = arith.mulf %0, %19 : vector<3x512xf32>
    %21 = math.sin %20 : vector<3x512xf32>
    %c0_16 = arith.constant 0 : index
    %c0_17 = arith.constant 0 : index
    %22 = vector.load %arg5[%c0_16, %c0_17] : memref<32x3xf32, #tpu.memory_space<vmem>>, vector<32x3xf32>
    %cst_18 = arith.constant dense<0.000000e+00> : vector<32x512xf32>
    %23 = tpu.matmul %22, %21, %cst_18 {dimension_numbers = #tpu.dot_dimension_numbers<[1], [0], [0], [1], [0, 0, 1, 1], [], []>} : vector<32x3xf32>, vector<3x512xf32>, vector<32x512xf32> -> vector<32x512xf32>
    %24 = arith.addf %18, %23 : vector<32x512xf32>
    %25 = math.cos %20 : vector<3x512xf32>
    %c0_19 = arith.constant 0 : index
    %c0_20 = arith.constant 0 : index
    %26 = vector.load %arg6[%c0_19, %c0_20] : memref<32x3xf32, #tpu.memory_space<vmem>>, vector<32x3xf32>
    %cst_21 = arith.constant dense<0.000000e+00> : vector<32x512xf32>
    %27 = tpu.matmul %26, %25, %cst_21 {dimension_numbers = #tpu.dot_dimension_numbers<[1], [0], [0], [1], [0, 0, 1, 1], [], []>} : vector<32x3xf32>, vector<3x512xf32>, vector<32x512xf32> -> vector<32x512xf32>
    %28 = arith.addf %24, %27 : vector<32x512xf32>
    %c0_22 = arith.constant 0 : index
    %c0_23 = arith.constant 0 : index
    %29 = vector.load %arg7[%c0_22, %c0_23] : memref<32x8xf32, #tpu.memory_space<vmem>>, vector<32x8xf32>
    %cst_24 = arith.constant dense<0.000000e+00> : vector<32x512xf32>
    %30 = tpu.matmul %29, %1, %cst_24 {dimension_numbers = #tpu.dot_dimension_numbers<[1], [0], [0], [1], [0, 0, 1, 1], [], []>} : vector<32x8xf32>, vector<8x512xf32>, vector<32x512xf32> -> vector<32x512xf32>
    %31 = arith.addf %28, %30 : vector<32x512xf32>
    %c0_25 = arith.constant 0 : index
    %c0_26 = arith.constant 0 : index
    %32 = vector.load %arg8[%c0_25, %c0_26] : memref<32x24xf32, #tpu.memory_space<vmem>>, vector<32x24xf32>
    %cst_27 = arith.constant dense<0.000000e+00> : vector<32x512xf32>
    %33 = tpu.matmul %32, %2, %cst_27 {dimension_numbers = #tpu.dot_dimension_numbers<[1], [0], [0], [1], [0, 0, 1, 1], [], []>} : vector<32x24xf32>, vector<24x512xf32>, vector<32x512xf32> -> vector<32x512xf32>
    %34 = arith.addf %31, %33 : vector<32x512xf32>
    %cst_28 = arith.constant 0.000000e+00 : f32
    %35 = vector.broadcast %cst_28 : f32 to vector<32x512xf32>
    %36 = arith.maximumf %34, %35 : vector<32x512xf32>
    %c0_29 = arith.constant 0 : index
    %c0_30 = arith.constant 0 : index
    %37 = vector.load %arg10[%c0_29, %c0_30] : memref<24x32xf32, #tpu.memory_space<vmem>>, vector<24x32xf32>
    %cst_31 = arith.constant dense<0.000000e+00> : vector<24x512xf32>
    %38 = tpu.matmul %37, %36, %cst_31 {dimension_numbers = #tpu.dot_dimension_numbers<[1], [0], [0], [1], [0, 0, 1, 1], [], []>} : vector<24x32xf32>, vector<32x512xf32>, vector<24x512xf32> -> vector<24x512xf32>
    %c0_32 = arith.constant 0 : index
    %c0_33 = arith.constant 0 : index
    %39 = vector.load %arg11[%c0_32, %c0_33] : memref<24x1xf32, #tpu.memory_space<vmem>>, vector<24x1xf32>
    %40 = vector.broadcast %39 : vector<24x1xf32> to vector<24x512xf32>
    %41 = arith.addf %38, %40 : vector<24x512xf32>
    %c0_34 = arith.constant 0 : index
    %c0_35 = arith.constant 0 : index
    %42 = vector.load %arg12[%c0_34, %c0_35] : memref<32x24xf32, #tpu.memory_space<vmem>>, vector<32x24xf32>
    %cst_36 = arith.constant dense<0.000000e+00> : vector<32x512xf32>
    %43 = tpu.matmul %42, %41, %cst_36 {dimension_numbers = #tpu.dot_dimension_numbers<[1], [0], [0], [1], [0, 0, 1, 1], [], []>} : vector<32x24xf32>, vector<24x512xf32>, vector<32x512xf32> -> vector<32x512xf32>
    %c0_37 = arith.constant 0 : index
    %c0_38 = arith.constant 0 : index
    %44 = vector.load %arg13[%c0_37, %c0_38] : memref<32x24xf32, #tpu.memory_space<vmem>>, vector<32x24xf32>
    %cst_39 = arith.constant dense<0.000000e+00> : vector<32x512xf32>
    %45 = tpu.matmul %44, %2, %cst_39 {dimension_numbers = #tpu.dot_dimension_numbers<[1], [0], [0], [1], [0, 0, 1, 1], [], []>} : vector<32x24xf32>, vector<24x512xf32>, vector<32x512xf32> -> vector<32x512xf32>
    %46 = arith.addf %43, %45 : vector<32x512xf32>
    %c0_40 = arith.constant 0 : index
    %c0_41 = arith.constant 0 : index
    %47 = vector.load %arg14[%c0_40, %c0_41] : memref<32x1xf32, #tpu.memory_space<vmem>>, vector<32x1xf32>
    %48 = vector.broadcast %47 : vector<32x1xf32> to vector<32x512xf32>
    %49 = arith.addf %46, %48 : vector<32x512xf32>
    %cst_42 = arith.constant 0.000000e+00 : f32
    %50 = vector.broadcast %cst_42 : f32 to vector<32x512xf32>
    %51 = arith.maximumf %49, %50 : vector<32x512xf32>
    %c0_43 = arith.constant 0 : index
    %c0_44 = arith.constant 0 : index
    %52 = vector.load %arg15[%c0_43, %c0_44] : memref<24x32xf32, #tpu.memory_space<vmem>>, vector<24x32xf32>
    %cst_45 = arith.constant dense<0.000000e+00> : vector<24x512xf32>
    %53 = tpu.matmul %52, %51, %cst_45 {dimension_numbers = #tpu.dot_dimension_numbers<[1], [0], [0], [1], [0, 0, 1, 1], [], []>} : vector<24x32xf32>, vector<32x512xf32>, vector<24x512xf32> -> vector<24x512xf32>
    %c0_46 = arith.constant 0 : index
    %c0_47 = arith.constant 0 : index
    %54 = vector.load %arg16[%c0_46, %c0_47] : memref<24x1xf32, #tpu.memory_space<vmem>>, vector<24x1xf32>
    %55 = vector.broadcast %54 : vector<24x1xf32> to vector<24x512xf32>
    %56 = arith.addf %53, %55 : vector<24x512xf32>
    %c0_48 = arith.constant 0 : index
    %c0_49 = arith.constant 0 : index
    %57 = vector.load %arg17[%c0_48, %c0_49] : memref<16x24xf32, #tpu.memory_space<vmem>>, vector<16x24xf32>
    %cst_50 = arith.constant dense<0.000000e+00> : vector<16x512xf32>
    %58 = tpu.matmul %57, %56, %cst_50 {dimension_numbers = #tpu.dot_dimension_numbers<[1], [0], [0], [1], [0, 0, 1, 1], [], []>} : vector<16x24xf32>, vector<24x512xf32>, vector<16x512xf32> -> vector<16x512xf32>
    %c0_51 = arith.constant 0 : index
    %c0_52 = arith.constant 0 : index
    %59 = vector.load %arg18[%c0_51, %c0_52] : memref<16x3xf32, #tpu.memory_space<vmem>>, vector<16x3xf32>
    %cst_53 = arith.constant dense<0.000000e+00> : vector<16x512xf32>
    %60 = tpu.matmul %59, %3, %cst_53 {dimension_numbers = #tpu.dot_dimension_numbers<[1], [0], [0], [1], [0, 0, 1, 1], [], []>} : vector<16x3xf32>, vector<3x512xf32>, vector<16x512xf32> -> vector<16x512xf32>
    %61 = arith.addf %58, %60 : vector<16x512xf32>
    %c0_54 = arith.constant 0 : index
    %c0_55 = arith.constant 0 : index
    %62 = vector.load %arg19[%c0_54, %c0_55] : memref<16x1xf32, #tpu.memory_space<vmem>>, vector<16x1xf32>
    %63 = vector.broadcast %62 : vector<16x1xf32> to vector<16x512xf32>
    %64 = arith.addf %61, %63 : vector<16x512xf32>
    %cst_56 = arith.constant 0.000000e+00 : f32
    %65 = vector.broadcast %cst_56 : f32 to vector<16x512xf32>
    %66 = arith.maximumf %64, %65 : vector<16x512xf32>
    %c0_57 = arith.constant 0 : index
    %c0_58 = arith.constant 0 : index
    %67 = vector.load %arg20[%c0_57, %c0_58] : memref<3x16xf32, #tpu.memory_space<vmem>>, vector<3x16xf32>
    %cst_59 = arith.constant dense<0.000000e+00> : vector<3x512xf32>
    %68 = tpu.matmul %67, %66, %cst_59 {dimension_numbers = #tpu.dot_dimension_numbers<[1], [0], [0], [1], [0, 0, 1, 1], [], []>} : vector<3x16xf32>, vector<16x512xf32>, vector<3x512xf32> -> vector<3x512xf32>
    %c0_60 = arith.constant 0 : index
    %c0_61 = arith.constant 0 : index
    %69 = vector.load %arg21[%c0_60, %c0_61] : memref<3x1xf32, #tpu.memory_space<vmem>>, vector<3x1xf32>
    %70 = vector.broadcast %69 : vector<3x1xf32> to vector<3x512xf32>
    %71 = arith.addf %68, %70 : vector<3x512xf32>
    %c0_62 = arith.constant 0 : index
    %c0_63 = arith.constant 0 : index
    %72 = vector.load %arg22[%c0_62, %c0_63] : memref<3x512xf32, #tpu.memory_space<vmem>>, vector<3x512xf32>
    tpu.vector_store %arg22[%c0_62, %c0_63], %71 {strides = array<i32>} : memref<3x512xf32, #tpu.memory_space<vmem>>, vector<3x512xf32>,
    return
  }
  func.func @transform_0(%arg0: i32) -> (i32, i32) {
    %c0_i32 = arith.constant 0 : i32
    %c0_i32_0 = arith.constant 0 : i32
    return %c0_i32, %arg0 : i32, i32
  }
  func.func @transform_1(%arg0: i32) -> (i32, i32) {
    %c0_i32 = arith.constant 0 : i32
    %c0_i32_0 = arith.constant 0 : i32
    %c0_i32_1 = arith.constant 0 : i32
    return %c0_i32, %c0_i32_0 : i32, i32
  }
  func.func @transform_2(%arg0: i32) -> (i32, i32) {
    %c0_i32 = arith.constant 0 : i32
    %c0_i32_0 = arith.constant 0 : i32
    %c0_i32_1 = arith.constant 0 : i32
    return %c0_i32, %c0_i32_0 : i32, i32
  }
  func.func @transform_3(%arg0: i32) -> (i32, i32) {
    %c0_i32 = arith.constant 0 : i32
    %c0_i32_0 = arith.constant 0 : i32
    %c0_i32_1 = arith.constant 0 : i32
    return %c0_i32, %c0_i32_0 : i32, i32
  }
  func.func @transform_4(%arg0: i32) -> (i32, i32) {
    %c0_i32 = arith.constant 0 : i32
    %c0_i32_0 = arith.constant 0 : i32
    %c0_i32_1 = arith.constant 0 : i32
    return %c0_i32, %c0_i32_0 : i32, i32
  }
  func.func @transform_5(%arg0: i32) -> (i32, i32) {
    %c0_i32 = arith.constant 0 : i32
    %c0_i32_0 = arith.constant 0 : i32
    %c0_i32_1 = arith.constant 0 : i32
    return %c0_i32, %c0_i32_0 : i32, i32
  }
  func.func @transform_6(%arg0: i32) -> (i32, i32) {
    %c0_i32 = arith.constant 0 : i32
    %c0_i32_0 = arith.constant 0 : i32
    %c0_i32_1 = arith.constant 0 : i32
    return %c0_i32, %c0_i32_0 : i32, i32
  }
  func.func @transform_7(%arg0: i32) -> (i32, i32) {
    %c0_i32 = arith.constant 0 : i32
    %c0_i32_0 = arith.constant 0 : i32
    %c0_i32_1 = arith.constant 0 : i32
    return %c0_i32, %c0_i32_0 : i32, i32
  }
  func.func @transform_8(%arg0: i32) -> (i32, i32) {
    %c0_i32 = arith.constant 0 : i32
    %c0_i32_0 = arith.constant 0 : i32
    %c0_i32_1 = arith.constant 0 : i32
    return %c0_i32, %c0_i32_0 : i32, i32
  }
  func.func @transform_9(%arg0: i32) -> (i32, i32) {
    %c0_i32 = arith.constant 0 : i32
    %c0_i32_0 = arith.constant 0 : i32
    %c0_i32_1 = arith.constant 0 : i32
    return %c0_i32, %c0_i32_0 : i32, i32
  }
  func.func @transform_10(%arg0: i32) -> (i32, i32) {
    %c0_i32 = arith.constant 0 : i32
    %c0_i32_0 = arith.constant 0 : i32
    %c0_i32_1 = arith.constant 0 : i32
    return %c0_i32, %c0_i32_0 : i32, i32
  }
  func.func @transform_11(%arg0: i32) -> (i32, i32) {
    %c0_i32 = arith.constant 0 : i32
    %c0_i32_0 = arith.constant 0 : i32
    %c0_i32_1 = arith.constant 0 : i32
    return %c0_i32, %c0_i32_0 : i32, i32
  }
  func.func @transform_12(%arg0: i32) -> (i32, i32) {
    %c0_i32 = arith.constant 0 : i32
    %c0_i32_0 = arith.constant 0 : i32
    %c0_i32_1 = arith.constant 0 : i32
    return %c0_i32, %c0_i32_0 : i32, i32
  }
  func.func @transform_13(%arg0: i32) -> (i32, i32) {
    %c0_i32 = arith.constant 0 : i32
    %c0_i32_0 = arith.constant 0 : i32
    %c0_i32_1 = arith.constant 0 : i32
    return %c0_i32, %c0_i32_0 : i32, i32
  }
  func.func @transform_14(%arg0: i32) -> (i32, i32) {
    %c0_i32 = arith.constant 0 : i32
    %c0_i32_0 = arith.constant 0 : i32
    %c0_i32_1 = arith.constant 0 : i32
    return %c0_i32, %c0_i32_0 : i32, i32
  }
  func.func @transform_15(%arg0: i32) -> (i32, i32) {
    %c0_i32 = arith.constant 0 : i32
    %c0_i32_0 = arith.constant 0 : i32
    %c0_i32_1 = arith.constant 0 : i32
    return %c0_i32, %c0_i32_0 : i32, i32
  }
  func.func @transform_16(%arg0: i32) -> (i32, i32) {
    %c0_i32 = arith.constant 0 : i32
    %c0_i32_0 = arith.constant 0 : i32
    %c0_i32_1 = arith.constant 0 : i32
    return %c0_i32, %c0_i32_0 : i32, i32
  }
  func.func @transform_17(%arg0: i32) -> (i32, i32) {
    %c0_i32 = arith.constant 0 : i32
    %c0_i32_0 = arith.constant 0 : i32
    %c0_i32_1 = arith.constant 0 : i32
    return %c0_i32, %c0_i32_0 : i32, i32
  }
  func.func @transform_18(%arg0: i32) -> (i32, i32) {
    %c0_i32 = arith.constant 0 : i32
    %c0_i32_0 = arith.constant 0 : i32
    %c0_i32_1 = arith.constant 0 : i32
    return %c0_i32, %c0_i32_0 : i32, i32
  }
  func.func @transform_19(%arg0: i32) -> (i32, i32) {
    %c0_i32 = arith.constant 0 : i32
    %c0_i32_0 = arith.constant 0 : i32
    %c0_i32_1 = arith.constant 0 : i32
    return %c0_i32, %c0_i32_0 : i32, i32
  }
  func.func @transform_20(%arg0: i32) -> (i32, i32) {
    %c0_i32 = arith.constant 0 : i32
    %c0_i32_0 = arith.constant 0 : i32
    %c0_i32_1 = arith.constant 0 : i32
    return %c0_i32, %c0_i32_0 : i32, i32
  }
  func.func @transform_21(%arg0: i32) -> (i32, i32) {
    %c0_i32 = arith.constant 0 : i32
    %c0_i32_0 = arith.constant 0 : i32
    return %c0_i32, %arg0 : i32, i32
  }
}

</mosaic_0001>

<bundles_post_ra>
// kernel: tpu_custom_call.1
= control target key start
LH: loop header
LB: loop body
LE: loop exit
PB: predicated region body
PF: predicated region fallthrough
CT: control target
= control target key end

     0   :  { %s7595_s0 = inlined_call_operand.vmem [shape: f32[48,1024], index: 0, kind: input, shape index: {}]   ;;  %s7596_s1 = inlined_call_operand.vmem [shape: f32[32,3], index: 1, kind: input, shape index: {}]   ;;  %s7597_s2 = inlined_call_operand.vmem [shape: f32[32,3], index: 2, kind: input, shape index: {}]   ;;  %s7598_s3 = inlined_call_operand.vmem [shape: f32[32,3], index: 3, kind: input, shape index: {}]   ;;  %s7599_s4 = inlined_call_operand.vmem [shape: f32[32,3], index: 4, kind: input, shape index: {}]   ;;  %s7600_s5 = inlined_call_operand.vmem [shape: f32[32,3], index: 5, kind: input, shape index: {}]   ;;  %s7601_s6 = inlined_call_operand.vmem [shape: f32[32,8], index: 6, kind: input, shape index: {}]   ;;  %s7602_s7 = inlined_call_operand.vmem [shape: f32[32,24], index: 7, kind: input, shape index: {}]   ;;  %s7603_s8 = inlined_call_operand.vmem [shape: f32[32,1], index: 8, kind: input, shape index: {}]   ;;  %s7604_s9 = inlined_call_operand.vmem [shape: f32[24,32], index: 9, kind: input, shape index: {}]   ;;  %s7605_s10 = inlined_call_operand.vmem [shape: f32[24,1], index: 10, kind: input, shape index: {}]   ;;  %s7606_s11 = inlined_call_operand.vmem [shape: f32[32,24], index: 11, kind: input, shape index: {}]   ;;  %s7607_s12 = inlined_call_operand.vmem [shape: f32[32,24], index: 12, kind: input, shape index: {}]   ;;  %s7608_s13 = inlined_call_operand.vmem [shape: f32[32,1], index: 13, kind: input, shape index: {}]   ;;  %s7609_s14 = inlined_call_operand.vmem [shape: f32[24,32], index: 14, kind: input, shape index: {}]   ;;  %s7610_s15 = inlined_call_operand.vmem [shape: f32[24,1], index: 15, kind: input, shape index: {}]   ;;  %s7611_s16 = inlined_call_operand.vmem [shape: f32[16,24], index: 16, kind: input, shape index: {}]   ;;  %s7612_s17 = inlined_call_operand.vmem [shape: f32[16,3], index: 17, kind: input, shape index: {}]   ;;  %s7613_s18 = inlined_call_operand.vmem [shape: f32[16,1], index: 18, kind: input, shape index: {}]   ;;  %s7614_s19 = inlined_call_operand.vmem [shape: f32[3,16], index: 19, kind: input, shape index: {}]   ;;  %s7615_s20 = inlined_call_operand.vmem [shape: f32[3,1], index: 20, kind: input, shape index: {}]   ;;  %s7616_s21 = inlined_call_operand.hbm [shape: f32[3,1024], index: 21, kind: output, shape index: {}]  }
   0x1   :  { %7628 = sst [smem:[#allocation7_spill]] %s7595_s0 }
   0x2   :  { %7629 = sst [smem:[#allocation8_spill]] %s7596_s1 }
   0x3   :  { %7630 = sst [smem:[#allocation9_spill]] %s7597_s2 }
   0x4   :  { %7631 = sst [smem:[#allocation10_spill]] %s7598_s3 }
   0x5   :  { %7632 = sst [smem:[#allocation11_spill]] %s7599_s4 }
   0x6   :  { %7633 = sst [smem:[#allocation12_spill]] %s7600_s5 }
   0x7   :  { %7634 = sst [smem:[#allocation13_spill]] %s7601_s6 }
   0x8   :  { %7635 = sst [smem:[#allocation14_spill]] %s7602_s7 }
   0x9   :  { %7636 = sst [smem:[#allocation15_spill]] %s7603_s8 }
   0xa   :  { %7637 = sst [smem:[#allocation16_spill]] %s7604_s9 }
   0xb   :  { %7638 = sst [smem:[#allocation17_spill]] %s7605_s10 }
   0xc   :  { %26 = vsyncpa [#allocation4], 0 }
   0xd   :  { %28 = vsyncpa [#allocation4 + $0x1], 0  ;;  %s6112_s2 = smov 0   ;;  %s6114_s25 = smov 0  }
   0xe   :  { %s6116_s26 = smov 0   ;;  %s6118_s27 = smov 0  }
   0xf LB: > { %s7622_s3 = sadd.s32 4294967295, %s5991_s27   ;;  %s5409_s28 = sadd.s32 4294967294, %s5991_s27   ;;  %s5991_s27 = sphi %s6118_s27, %s7671_s27   ;;  %s5987_s26 = sphi %s6116_s26, %s7670_s26   ;;  %s5983_s25 = sphi %s6114_s25, %s7669_s25   ;;  %s5979_s2 = sphi %s6112_s2, %s7668_s2  }
  0x10   : > { %s6135_s29 = sadd.s32 1, %s5991_s27   ;;  %s41_s0 = sadd.s32 1, %s5987_s26 }
  0x11   : > { %s38_s4 = ssub.s32 %s5991_s27, %s6135_s29  ;;  %p48_p0 = scmp.ne.s32.totalorder %s5987_s26, %s5983_s25 }
  0x12   : > { %p39_p1 = scmp.eq.s32.totalorder %s38_s4, 0  ;;  %p49_p2 = scmp.eq.s32.totalorder %s5991_s27, 0 }
  0x13   : > { %p498_p3 = scmp.eq.s32.totalorder %s7622_s3, 1  ;;  %p503_p4 = scmp.ne.s32.totalorder %s5983_s25, %s5979_s2 }
  0x14   : > { %s6148_s30 = scalar_select %p39_p1, %s5987_s26, %s41_s0  }
  0x15   : > { %p50_p5 = por %p49_p2, %p48_p0  ;;  %p6150_p6 = por %p498_p3, %p48_p0 }
  0x16   : > { %7639 = sst [smem:[#allocation6_spill]] %s6148_s30  ;;  %p504_p7 = scmp.eq.s32.totalorder %s5409_s28, 1 }
  0x17   : > { %p5411_p9 = scmp.ge.s32.totalorder %s5991_s27, 2 }
  0x18   : > { %p6154_p8 = por %p504_p7, %p503_p4 }
  0x19   : > { %580 = sbr.rel (%p5411_p9) target bundleno = 55 (0x37), region = 96 }
  0x20   : > { %583 = sbr.rel (!%p50_p5) target bundleno = 55 (0x37), region = 100  ;;  %s585_s23 = sand.u32 (%p50_p5), 1, %s5987_s26  }
  0x21   : > { %s5603_s1 = sshll.u32 (%p50_p5), %s5991_s27, 5  ;;  %s5813_s24 = smul.u32 (%p50_p5), 192, %s585_s23 }
  0x22   : > { %s7642_s3 = sld [smem:[#allocation7_spill]] (%p50_p5) }
  0x28   : > { %s6166_s30 = scalar_lea.vmem %s7642_s3, %s5603_s1  ;;  %s6174_s3 = scalar_lea.vmem [#allocation2], %s5813_s24 }
  0x29   : > { %v603_v0 = vld [vmem:[%s6166_s30] sm:$0xff]  ;;  %v605_v1 = vld [vmem:[%s6166_s30 + $0x8] sm:$0xff]  ;;  %v607_v2 = vld [vmem:[%s6166_s30 + $0x10] sm:$0xff] }
  0x2a   : > { %v609_v3 = vld [vmem:[%s6166_s30 + $0x18] sm:$0xff]  ;;  %v611_v4 = vld [vmem:[%s6166_s30 + $0x40] sm:$0xff]  ;;  %v613_v5 = vld [vmem:[%s6166_s30 + $0x48] sm:$0xff]  ;;  %604 = vst [vmem:[%s6174_s3] sm:$0xff] %v603_v0 }
  0x2b   : > { %606 = vst [vmem:[%s6174_s3 + $0x8] sm:$0xff] %v605_v1  ;;  %608 = vst [vmem:[%s6174_s3 + $0x10] sm:$0xff] %v607_v2  ;;  %v615_v6 = vld [vmem:[%s6166_s30 + $0x50] sm:$0xff]  ;;  %v617_v7 = vld [vmem:[%s6166_s30 + $0x58] sm:$0xff] }
  0x2c   : > { %610 = vst [vmem:[%s6174_s3 + $0x18] sm:$0xff] %v609_v3  ;;  %612 = vst [vmem:[%s6174_s3 + $0x20] sm:$0xff] %v611_v4  ;;  %v619_v8 = vld [vmem:[%s6166_s30 + $0x80] sm:$0xff]  ;;  %v621_v9 = vld [vmem:[%s6166_s30 + $0x88] sm:$0xff] }
  0x2d   : > { %614 = vst [vmem:[%s6174_s3 + $0x28] sm:$0xff] %v613_v5  ;;  %616 = vst [vmem:[%s6174_s3 + $0x30] sm:$0xff] %v615_v6  ;;  %v623_v10 = vld [vmem:[%s6166_s30 + $0x90] sm:$0xff]  ;;  %v625_v11 = vld [vmem:[%s6166_s30 + $0x98] sm:$0xff] }
  0x2e   : > { %618 = vst [vmem:[%s6174_s3 + $0x38] sm:$0xff] %v617_v7  ;;  %620 = vst [vmem:[%s6174_s3 + $0x40] sm:$0xff] %v619_v8  ;;  %v627_v12 = vld [vmem:[%s6166_s30 + $0xc0] sm:$0xff]  ;;  %v629_v13 = vld [vmem:[%s6166_s30 + $0xc8] sm:$0xff] }
  0x2f   : > { %622 = vst [vmem:[%s6174_s3 + $0x48] sm:$0xff] %v621_v9  ;;  %624 = vst [vmem:[%s6174_s3 + $0x50] sm:$0xff] %v623_v10  ;;  %v631_v14 = vld [vmem:[%s6166_s30 + $0xd0] sm:$0xff]  ;;  %v633_v15 = vld [vmem:[%s6166_s30 + $0xd8] sm:$0xff] }
  0x30   : > { %626 = vst [vmem:[%s6174_s3 + $0x58] sm:$0xff] %v625_v11  ;;  %628 = vst [vmem:[%s6174_s3 + $0x60] sm:$0xff] %v627_v12  ;;  %v635_v16 = vld [vmem:[%s6166_s30 + $0x100] sm:$0xff]  ;;  %v637_v17 = vld [vmem:[%s6166_s30 + $0x108] sm:$0xff] }
  0x31   : > { %630 = vst [vmem:[%s6174_s3 + $0x68] sm:$0xff] %v629_v13  ;;  %632 = vst [vmem:[%s6174_s3 + $0x70] sm:$0xff] %v631_v14  ;;  %v639_v18 = vld [vmem:[%s6166_s30 + $0x110] sm:$0xff]  ;;  %v641_v19 = vld [vmem:[%s6166_s30 + $0x118] sm:$0xff] }
  0x32   : > { %634 = vst [vmem:[%s6174_s3 + $0x78] sm:$0xff] %v633_v15  ;;  %636 = vst [vmem:[%s6174_s3 + $0x80] sm:$0xff] %v635_v16  ;;  %v643_v20 = vld [vmem:[%s6166_s30 + $0x140] sm:$0xff]  ;;  %v645_v21 = vld [vmem:[%s6166_s30 + $0x148] sm:$0xff] }
  0x33   : > { %638 = vst [vmem:[%s6174_s3 + $0x88] sm:$0xff] %v637_v17  ;;  %640 = vst [vmem:[%s6174_s3 + $0x90] sm:$0xff] %v639_v18  ;;  %v647_v22 = vld [vmem:[%s6166_s30 + $0x150] sm:$0xff]  ;;  %v649_v23 = vld [vmem:[%s6166_s30 + $0x158] sm:$0xff] }
  0x34   : > { %642 = vst [vmem:[%s6174_s3 + $0x98] sm:$0xff] %v641_v19  ;;  %644 = vst [vmem:[%s6174_s3 + $0xa0] sm:$0xff] %v643_v20 }
  0x35   : > { %646 = vst [vmem:[%s6174_s3 + $0xa8] sm:$0xff] %v645_v21  ;;  %648 = vst [vmem:[%s6174_s3 + $0xb0] sm:$0xff] %v647_v22 }
  0x36   : > { %650 = vst [vmem:[%s6174_s3 + $0xb8] sm:$0xff] %v649_v23 }
  0x37 PF: > { %p5414_p10 = scmp.ge.s32.totalorder %s5991_s27, 1  ;;  %p655_p11 = scmp.lt.s32.totalorder %s5991_s27, 3 }
  0x39   : > { %p656_p12 = pnand %p5414_p10, %p655_p11 }
  0x3a   : > { %s6221_s28 = sand.u32 (!%p656_p12), 1, %s5983_s25   ;;  %v5993_v24 = vmov (!%p656_p12), 0.0   ;;  %vm788_vm0 = vcmask (!%p656_p12), 1042432   ;;  %s7643_s24 = sld [smem:[#allocation8_spill]] (!%p656_p12)  ;;  %vm775_vm1 = vcmask (!%p656_p12), 23552  }
  0x3b   : > { %659 = sbr.rel (%p656_p12) target bundleno = 1736 (0x6c8), region = 123  ;;  %865 = vmatprep.mubr.f32.mxu0 (!%p656_p12), %v5993_v24  ;;  %954 = vmatprep.mubr.f32.mxu1 (!%p656_p12), %v5993_v24  ;;  %v5994_v1 = vmov (!%p656_p12), 683565275   ;;  %v5995_v3 = vmov (!%p656_p12), 2475754826   ;;  %s7652_s30 = sld [smem:[#allocation9_spill]] (!%p656_p12) }
  0x3c   : > { %s5814_s23 = smul.u32 (!%p656_p12), 192, %s6221_s28  ;;  %v5996_v5 = vmov (!%p656_p12), 2131351028   ;;  %v5997_v11 = vmov (!%p656_p12), 2102212464   ;;  %s7654_s1 = sld [smem:[#allocation10_spill]] (!%p656_p12) }
  0x3d   : > { %v5998_v14 = vmov (!%p656_p12), 920167782   ;;  %v5999_v19 = vmov (!%p656_p12), 1326507024   ;;  %s7659_s8 = sld [smem:[#allocation15_spill]] (!%p656_p12)  ;;  %s7660_s10 = sld [smem:[#allocation17_spill]] (!%p656_p12) }
  0x3e   : > { %s6229_s0 = scalar_lea.vmem (!%p656_p12), [#allocation2], %s5814_s23  ;;  %s7662_s4 = sld [smem:[#allocation12_spill]] (!%p656_p12) }
  0x3f   : > { %v6232_v26 = vld [vmem:[%s6229_s0 + $0x8] sm:$0x7] (!%p656_p12)  ;;  %v6235_v27 = vld [vmem:[%s6229_s0 + $0x18] sm:$0x7] (!%p656_p12)  ;;  %v6238_v28 = vld [vmem:[%s6229_s0] sm:$0x7] (!%p656_p12) }
  0x40   : > { %v747_v25 = vld [vmem:[%s7643_s24] sm:$0xff] (!%p656_p12)  ;;  %5416 = vmatprep.subr.msk.mxu0 (!%p656_p12), %vm788_vm0, %v6232_v26  ;;  %v1086_v29 = vand.u32 (!%p656_p12), 2139095040, %v6232_v26  ;;  %5422 = vmatprep.subr.msk.mxu1 (!%p656_p12), %vm788_vm0, %v6235_v27  ;;  %v1294_v30 = vand.u32 (!%p656_p12), 2139095040, %v6235_v27  ;;  %v982_v31 = vand.u32 (!%p656_p12), 2139095040, %v6238_v28  ;;  %v6248_v32 = vld [vmem:[%s6229_s0 + $0x10] sm:$0x7] (!%p656_p12) }
  0x41   : > { %5417 = vmatpush1.msk.msra.mxu0 (!%p656_p12), %vm788_vm0, %v6238_v28  ;;  %5423 = vmatpush1.msk.msra.mxu1 (!%p656_p12), %vm788_vm0, %v6248_v32  ;;  %v1083_v33 = vand.u32 (!%p656_p12), 2147483647, %v6232_v26  ;;  %v1190_v37 = vand.u32 (!%p656_p12), 2139095040, %v6248_v32  ;;  %v748_v38 = vld [vmem:[%s7643_s24 + $0x8] sm:$0xff] (!%p656_p12)  ;;  %v1291_v43 = vand.u32 (!%p656_p12), 2147483647, %v6235_v27 }
  0x42   : > { %v1087_v34 = vshrl.u32 %v1086_v29, 23  ;;  %v1295_v35 = vshrl.u32 %v1294_v30, 23  ;;  %v983_v36 = vshrl.u32 %v982_v31, 23  ;;  %5418 = vmatmul.mubr.msk.f32.vlgmr.msra.gmra.mrb[0].mxu0 %vm775_vm1, %v747_v25  ;;  %5424 = vmatmul.mubr.msk.f32.vlgmr.msra.gmra.mrb[0].mxu1 %vm775_vm1, %v747_v25  ;;  %v749_v47 = vld [vmem:[%s7643_s24 + $0x10] sm:$0xff]  ;;  %v750_v56 = vld [vmem:[%s7643_s24 + $0x18] sm:$0xff]  ;;  %vm1085_vm14 = vcmp.lt.s32.totalorder %v6232_v26, 0 }
  0x43   : > { %871 = vmatprep.mubr.f32.mxu0 %v5993_v24  ;;  %960 = vmatprep.mubr.f32.mxu1 %v5993_v24  ;;  %v1090_v39 = vand.u32 8388607, %v1083_v33  ;;  %v1191_v48 = vshrl.u32 %v1190_v37, 23  ;;  %v1298_v50 = vand.u32 8388607, %v1291_v43  ;;  %s7663_s6 = sld [smem:[#allocation13_spill]] }
  0x44   : > { %v5432_v40 = vadd.s32 4294967169, %v1087_v34  ;;  %v5440_v41 = vadd.s32 4294967169, %v1295_v35  ;;  %v5428_v42 = vadd.s32 4294967169, %v983_v36  ;;  %v979_v59 = vand.u32 2147483647, %v6238_v28  ;;  %s7664_s7 = sld [smem:[#allocation14_spill]] }
  0x45   : > { %v1091_v49 = vor.u32 8388608, %v1090_v39  ;;  %v6284_v57 = vadd.s32 4294967169, %v1191_v48  ;;  %v1299_v63 = vor.u32 8388608, %v1298_v50  ;;  %s7665_s9 = sld [smem:[#allocation16_spill]]  ;;  %s5415_s3 = sshll.u32 %s6221_s28, 4 }
  0x46   : > { %v1093_v44 = vadd.s32 1, %v5432_v40  ;;  %v1301_v45 = vadd.s32 1, %v5440_v41  ;;  %v989_v46 = vadd.s32 1, %v5428_v42  ;;  %5419 = vmatmul.mubr.msk.f32.gmra.mrb[2].mxu0 %vm775_vm1, %v748_v38  ;;  %5425 = vmatmul.mubr.msk.f32.gmra.mrb[2].mxu1 %vm775_vm1, %v748_v38 }
  0x47   : > { %877 = vmatprep.mubr.f32.mxu0 %v5993_v24  ;;  %966 = vmatprep.mubr.f32.mxu1 %v5993_v24  ;;  %v6288_v58 = vshll.u32 %v1091_v49, 8  ;;  %v6312_v35 = vshll.u32 %v1299_v63, 8 }
  0x48   : > { %vm1094_vm2 = vcmp.gt.s32.totalorder %v1093_v44, 0  ;;  %vm1302_vm3 = vcmp.gt.s32.totalorder %v1301_v45, 0  ;;  %vm990_vm4 = vcmp.gt.s32.totalorder %v989_v46, 0 }
  0x49   : > { %v1095_v51 = vsel %vm1094_vm2, %v1093_v44, 0  ;;  %v1303_v52 = vsel %vm1302_vm3, %v1301_v45, 0  ;;  %v6277_v55 = vsel %vm990_vm4, %v989_v46, 0  ;;  %vm6400_vm3 = vcmp.le.f32.partialorder %v1083_v33, 0.7853982 }
  0x4a   : > { %v1097_v53 = vand.u32 31, %v1095_v51  ;;  %v6275_v54 = vand.u32 31, %v1303_v52  ;;  %5420 = vmatmul.mubr.msk.f32.gmra.mrb[4].mxu0 %vm775_vm1, %v749_v47  ;;  %5426 = vmatmul.mubr.msk.f32.gmra.mrb[4].mxu1 %vm775_vm1, %v749_v47  ;;  %v1096_v60 = vshrl.u32 %v1095_v51, 5  ;;  %v6291_v62 = vshrl.u32 %v1303_v52, 5 }
  0x4b   : > { %883 = vmatprep.mubr.f32.mxu0 %v5993_v24  ;;  %972 = vmatprep.mubr.f32.mxu1 %v5993_v24  ;;  %v6294_v0 = vand.u32 31, %v6277_v55 }
  0x4c   : > { %v1098_v61 = vsub.s32 32, %v1097_v53  ;;  %v1100_v2 = vshll.u32 %v5994_v1, %v1097_v53  ;;  %v1103_v4 = vshll.u32 %v5995_v3, %v1097_v53  ;;  %v1106_v6 = vshll.u32 %v5996_v5, %v1097_v53 }
  0x4d   : > { %v1306_v7 = vsub.s32 32, %v6275_v54  ;;  %v1109_v13 = vshll.u32 %v5997_v11, %v1097_v53  ;;  %v1112_v16 = vshll.u32 %v5998_v14, %v1097_v53  ;;  %vm1115_vm5 = vcmp.lt.s32.totalorder %v1096_v60, 1 }
  0x4e   : > { %5421 = vmatmul.mubr.msk.f32.gmra.mrb[6].mxu0 %vm775_vm1, %v750_v56  ;;  %5427 = vmatmul.mubr.msk.f32.gmra.mrb[6].mxu1 %vm775_vm1, %v750_v56  ;;  %v1099_v8 = vshrl.u32 %v5994_v1, %v1098_v61  ;;  %v1101_v9 = vshrl.u32 %v5995_v3, %v1098_v61  ;;  %v1104_v10 = vshrl.u32 %v5996_v5, %v1098_v61  ;;  %vm1116_vm6 = vcmp.lt.s32.totalorder %v1096_v60, 2 }
  0x4f   : > { %v1107_v12 = vshrl.u32 %v5997_v11, %v1098_v61  ;;  %v1110_v15 = vshrl.u32 %v5998_v14, %v1098_v61  ;;  %1487 = vmatprep.mubr.f32.mxu0 %v5993_v24  ;;  %v1113_v20 = vshrl.u32 %v5999_v19, %v1098_v61  ;;  %1576 = vmatprep.mubr.f32.mxu1 %v5993_v24  ;;  %vm1117_vm7 = vcmp.lt.s32.totalorder %v1096_v60, 3 }
  0x50   : > { %v1102_v17 = vor.u32 %v1101_v9, %v1100_v2  ;;  %v1105_v18 = vor.u32 %v1104_v10, %v1103_v4  ;;  %vm1118_vm8 = vcmp.lt.s32.totalorder %v1096_v60, 4  ;;  %v1308_v39 = vshll.u32 %v5994_v1, %v6275_v54 }
  0x51   : > { %v1108_v21 = vor.u32 %v1107_v12, %v1106_v6  ;;  %v1111_v22 = vor.u32 %v1110_v15, %v1109_v13  ;;  %v1114_v23 = vor.u32 %v1113_v20, %v1112_v16  ;;  %v1309_v44 = vshrl.u32 %v5995_v3, %v1306_v7 }
  0x52   : > { %v1119_v25 = vsel %vm1115_vm5, %v1099_v8, %v1102_v17  ;;  %v1123_v29 = vsel %vm1115_vm5, %v1102_v17, %v1105_v18  ;;  %v1307_v48 = vshrl.u32 %v5994_v1, %v1306_v7  ;;  %v1311_v52 = vshll.u32 %v5995_v3, %v6275_v54 }
  0x53   : > { %v1120_v30 = vsel %vm1118_vm8, %v1108_v21, 2102212464  ;;  %v1124_v31 = vsel %vm1118_vm8, %v1111_v22, 920167782  ;;  %v1127_v34 = vsel %vm1115_vm5, %v1105_v18, %v1108_v21  ;;  %v1128_v38 = vsel %vm1118_vm8, %v1114_v23, 1326507024 }
  0x54   : > { %v1121_v36 = vsel %vm1117_vm7, %v1105_v18, %v1120_v30  ;;  %v1125_v37 = vsel %vm1117_vm7, %v1108_v21, %v1124_v31  ;;  %v1129_v42 = vsel %vm1117_vm7, %v1111_v22, %v1128_v38  ;;  %v1312_v53 = vshrl.u32 %v5996_v5, %v1306_v7 }
  0x55   : > { %v1122_v40 = vsel %vm1116_vm6, %v1119_v25, %v1121_v36  ;;  %v1126_v41 = vsel %vm1116_vm6, %v1123_v29, %v1125_v37  ;;  %v1130_v45 = vsel %vm1116_vm6, %v1127_v34, %v1129_v42  ;;  %v1314_v56 = vshll.u32 %v5996_v5, %v6275_v54 }
  0x56   : > { %v6321_v46 = vmul.u32.u64.low %v6288_v58, %v1126_v41  ;;  %v6322_v47 = vmul.u32.u64.high %v6288_v58, %v1126_v41, %v6321_v46  ;;  %v6327_v49 = vmul.u32.u64.low %v6288_v58, %v1130_v45  ;;  %v6328_v50 = vmul.u32.u64.high %v6288_v58, %v1130_v45, %v6327_v49 }
  0x57   : > { %v1138_v51 = vmul.u32 %v6288_v58, %v1122_v40  ;;  %v1315_v60 = vshrl.u32 %v5997_v11, %v1306_v7  ;;  %v1317_v61 = vshll.u32 %v5997_v11, %v6275_v54  ;;  %v1310_v63 = vor.u32 %v1309_v44, %v1308_v39 }
  0x58   : > { %v1318_v2 = vshrl.u32 %v5998_v14, %v1306_v7  ;;  %v1320_v4 = vshll.u32 %v5998_v14, %v6275_v54  ;;  %v1321_v58 = vshrl.u32 %v5999_v19, %v1306_v7  ;;  %v1141_v6 = vadd.s32 1, %v6322_v47 }
  0x59   : > { %v1313_v8 = vor.u32 %v1312_v53, %v1311_v52  ;;  %v1316_v9 = vor.u32 %v1315_v60, %v1314_v56  ;;  %vm1323_vm9 = vcmp.lt.s32.totalorder %v6291_v62, 1  ;;  %vm1140_vm10 = vc.u32 %v6328_v50, %v6321_v46 }
  0x5a   : > { %v1319_v10 = vor.u32 %v1318_v2, %v1317_v61  ;;  %v1322_v12 = vor.u32 %v1321_v58, %v1320_v4  ;;  %vm1324_vm11 = vcmp.lt.s32.totalorder %v6291_v62, 2  ;;  %v1142_v13 = vsel %vm1140_vm10, %v1141_v6, %v6322_v47 }
  0x5b   : > { %vm1325_vm12 = vcmp.lt.s32.totalorder %v6291_v62, 3  ;;  %vm1326_vm13 = vcmp.lt.s32.totalorder %v6291_v62, 4  ;;  %v1327_v54 = vsel %vm1323_vm9, %v1307_v48, %v1310_v63  ;;  %v1143_v7 = vadd.s32 %v1142_v13, %v1138_v51 }
  0x5c   : > { %v1328_v15 = vsel %vm1326_vm13, %v1316_v9, 2102212464  ;;  %v1331_v16 = vsel %vm1323_vm9, %v1310_v63, %v1313_v8  ;;  %v1332_v17 = vsel %vm1326_vm13, %v1319_v10, 920167782  ;;  %v1335_v21 = vsel %vm1323_vm9, %v1313_v8, %v1316_v9 }
  0x5d   : > { %v1329_v18 = vsel %vm1325_vm12, %v1313_v8, %v1328_v15  ;;  %v1333_v20 = vsel %vm1325_vm12, %v1316_v9, %v1332_v17  ;;  %v1336_v22 = vsel %vm1326_vm13, %v1322_v12, 1326507024  ;;  %v994_v23 = vsub.s32 32, %v6294_v0 }
  0x5e   : > { %v1144_v25 = vadd.s32 536870912, %v1143_v7  ;;  %v1334_v29 = vsel %vm1324_vm11, %v1331_v16, %v1333_v20  ;;  %v1337_v30 = vsel %vm1325_vm12, %v1319_v10, %v1336_v22  ;;  %v1330_v31 = vsel %vm1324_vm11, %v1327_v54, %v1329_v18 }
  0x5f   : > { %v1338_v34 = vsel %vm1324_vm11, %v1335_v21, %v1337_v30  ;;  %v6359_v36 = vmul.u32.u64.low %v6312_v35, %v1334_v29  ;;  %v6360_v37 = vmul.u32.u64.high %v6312_v35, %v1334_v29, %v6359_v36  ;;  %v1197_v41 = vadd.s32 1, %v6284_v57 }
  0x60   : > { %v1145_v38 = vshrl.u32 %v1144_v25, 30  ;;  %v6364_v39 = vmul.u32.u64.low %v6312_v35, %v1338_v34  ;;  %v6365_v40 = vmul.u32.u64.high %v6312_v35, %v1338_v34, %v6364_v39  ;;  %v1346_v44 = vmul.u32 %v6312_v35, %v1330_v31 }
  0x61   : > { %v986_v45 = vand.u32 8388607, %v979_v59  ;;  %v6372_v62 = vshrl.u32 %v6277_v55, 5  ;;  %v1349_v47 = vadd.s32 1, %v6360_v37  ;;  %v996_v48 = vshll.u32 %v5994_v1, %v6294_v0 }
  0x62   : > { %v1146_v42 = vshll.u32 %v1145_v38, 30  ;;  %v997_v49 = vshrl.u32 %v5995_v3, %v994_v23  ;;  %vm1348_vm15 = vc.u32 %v6365_v40, %v6359_v36  ;;  %v999_v57 = vshll.u32 %v5995_v3, %v6294_v0 }
  0x63   : > { %v1005_v55 = vshll.u32 %v5997_v11, %v6294_v0  ;;  %v1350_v35 = vsel %vm1348_vm15, %v1349_v47, %v6360_v37  ;;  %v1000_v52 = vshrl.u32 %v5996_v5, %v994_v23  ;;  %v1002_v53 = vshll.u32 %v5996_v5, %v6294_v0 }
  0x64   : > { %v6379_v51 = vsub.s32 %v1143_v7, %v1146_v42  ;;  %v1003_v56 = vshrl.u32 %v5997_v11, %v994_v23  ;;  %vm1198_vm2 = vcmp.gt.s32.totalorder %v1197_v41, 0  ;;  %v1351_v61 = vadd.s32 %v1350_v35, %v1346_v44 }
  0x65   : > { %v1006_v63 = vshrl.u32 %v5998_v14, %v994_v23  ;;  %v987_v2 = vor.u32 8388608, %v986_v45  ;;  %v995_v4 = vshrl.u32 %v5994_v1, %v994_v23  ;;  %v1008_v58 = vshll.u32 %v5998_v14, %v6294_v0 }
  0x66   : > { %v1149_v60 = vsub.s32 0, %v6379_v51  ;;  %v1009_v6 = vshrl.u32 %v5999_v19, %v994_v23  ;;  %v1169_v10 = vsub.s32 4, %v1145_v38  ;;  %v1352_v12 = vadd.s32 536870912, %v1351_v61 }
  0x67   : > { %v1007_v13 = vor.u32 %v1006_v63, %v1005_v55  ;;  %v998_v54 = vor.u32 %v997_v49, %v996_v48  ;;  %v1001_v7 = vor.u32 %v1000_v52, %v999_v57  ;;  %v1004_v15 = vor.u32 %v1003_v56, %v1002_v53 }
  0x68   : > { %v5433_v9 = vmin.u32 %v1149_v60, %v6379_v51  ;;  %vm1014_vm4 = vcmp.lt.s32.totalorder %v6372_v62, 4  ;;  %v1010_v0 = vor.u32 %v1009_v6, %v1008_v58  ;;  %vm1011_vm5 = vcmp.lt.s32.totalorder %v6372_v62, 1 }
  0x69   : > { %vm1013_vm6 = vcmp.lt.s32.totalorder %v6372_v62, 3  ;;  %v1199_v33 = vsel %vm1198_vm2, %v1197_v41, 0  ;;  %v1139_v17 = vadd.s32 %v6321_v46, %v6328_v50  ;;  %v1353_v18 = vshrl.u32 %v1352_v12, 30 }
  0x6a   : > { %v1151_v16 = vclz %v5433_v9  ;;  %v1020_v20 = vsel %vm1014_vm4, %v1007_v13, 920167782  ;;  %v1170_v22 = vsel %vm1085_vm14, %v1169_v10, %v1145_v38  ;;  %vm1012_vm7 = vcmp.lt.s32.totalorder %v6372_v62, 2 }
  0x6b   : > { %v1016_v23 = vsel %vm1014_vm4, %v1004_v15, 2102212464  ;;  %v1354_v25 = vshll.u32 %v1353_v18, 30  ;;  %v1015_v29 = vsel %vm1011_vm5, %v995_v4, %v998_v54  ;;  %v1019_v30 = vsel %vm1011_vm5, %v998_v54, %v1001_v7 }
  0x6c   : > { %v5434_v21 = vadd.s32 4294967294, %v1151_v16  ;;  %v1021_v31 = vsel %vm1013_vm6, %v1004_v15, %v1020_v20  ;;  %v1023_v46 = vsel %vm1011_vm5, %v1001_v7, %v1004_v15  ;;  %v1024_v50 = vsel %vm1014_vm4, %v1010_v0, 1326507024 }
  0x6d   : > { %v1027_v34 = vshll.u32 %v987_v2, 8  ;;  %v6422_v39 = vsub.s32 %v1351_v61, %v1354_v25  ;;  %v1017_v38 = vsel %vm1013_vm6, %v1001_v7, %v1016_v23  ;;  %v1025_v41 = vsel %vm1013_vm6, %v1007_v13, %v1024_v50 }
  0x6e   : > { %vm5435_vm8 = vcmp.lt.s32.totalorder %v5434_v21, 0  ;;  %v1022_v47 = vsel %vm1012_vm7, %v1019_v30, %v1021_v31  ;;  %v6433_v48 = vsel %vm6400_vm3, 0, %v1170_v22  ;;  %v1377_v57 = vsub.s32 4, %v1353_v18 }
  0x6f   : > { %v1154_v37 = vsel %vm5435_vm8, 0, %v5434_v21  ;;  %v1357_v49 = vsub.s32 0, %v6422_v39  ;;  %v1026_v55 = vsel %vm1012_vm7, %v1023_v46, %v1025_v41  ;;  %v1018_v60 = vsel %vm1012_vm7, %v1015_v29, %v1017_v38 }
  0x70   : > { %v1155_v42 = vsub.s32 32, %v1154_v37  ;;  %v1156_v44 = vshll.u32 %v6379_v51, %v1154_v37  ;;  %v1159_v45 = vsub.s32 4294967266, %v1154_v37  ;;  %v1201_v2 = vand.u32 31, %v1199_v33 }
  0x71   : > { %v6438_v53 = vmul.u32.u64.low %v1027_v34, %v1026_v55  ;;  %v6439_v56 = vmul.u32.u64.high %v1027_v34, %v1026_v55, %v6438_v53  ;;  %v5441_v51 = vmin.u32 %v1357_v49, %v6422_v39  ;;  %v1176_v6 = vadd.s32 3, %v6433_v48 }
  0x72   : > { %v1157_v35 = vshrl.u32 %v1139_v17, %v1155_v42  ;;  %v1160_v52 = vadd.s32 127, %v1159_v45  ;;  %v6444_v61 = vmul.u32.u64.low %v1027_v34, %v1022_v47  ;;  %v6445_v63 = vmul.u32.u64.high %v1027_v34, %v1022_v47, %v6444_v61 }
  0x73   : > { %vm1293_vm9 = vcmp.lt.s32.totalorder %v6235_v27, 0  ;;  %v1359_v9 = vclz %v5441_v51  ;;  %v1034_v13 = vmul.u32 %v1027_v34, %v1018_v60  ;;  %v1187_v15 = vand.u32 2147483647, %v6248_v32 }
  0x74   : > { %v1158_v4 = vor.u32 %v1157_v35, %v1156_v44  ;;  %v1161_v58 = vshll.u32 %v1160_v52, 23  ;;  %vm1036_vm10 = vc.u32 %v6439_v56, %v6444_v61  ;;  %v1378_v54 = vsel %vm1293_vm9, %v1377_v57, %v1353_v18 }
  0x75   : > { %v5442_v62 = vadd.s32 4294967294, %v1359_v9  ;;  %v1037_v7 = vadd.s32 1, %v6445_v63  ;;  %v6456_v16 = vshrl.u32 %v1199_v33, 5  ;;  %v1202_v0 = vsub.s32 32, %v1201_v2 }
  0x76   : > { %v1162_v10 = vor.u32 4788187, %v1161_v58  ;;  %v1165_v12 = vcvt.s32.f32 %v1158_v4  ;;  %vm6460_vm11 = vcmp.le.f32.partialorder %v1291_v43, 0.7853982  ;;  %v6464_v21 = vand.u32 3, %v1176_v6 }
  0x77   : > { %v1347_v22 = vadd.s32 %v6359_v36, %v6365_v40  ;;  %vm5443_vm12 = vcmp.lt.s32.totalorder %v5442_v62, 0  ;;  %v1038_v18 = vsel %vm1036_vm10, %v1037_v7, %v6445_v63  ;;  %v6471_v33 = vsel %vm6460_vm11, 0, %v1378_v54 }
  0x78   : > { %v1163_v17 = vand.u32 2147483647, %v1162_v10  ;;  %v1362_v25 = vsel %vm5443_vm12, 0, %v5442_v62  ;;  %v1039_v29 = vadd.s32 %v1038_v18, %v1034_v13  ;;  %v1194_v46 = vand.u32 8388607, %v1187_v15 }
  0x79   : > { %v1363_v30 = vsub.s32 32, %v1362_v25  ;;  %v1364_v43 = vshll.u32 %v6422_v39, %v1362_v25  ;;  %v1367_v31 = vsub.s32 4294967266, %v1362_v25  ;;  %v1204_v36 = vshll.u32 %v5994_v1, %v1201_v2 }
  0x7a   : > { %v1166_v23 = vmul.f32 %v1165_v12, %v1163_v17  ;;  %v1040_v34 = vadd.s32 536870912, %v1039_v29  ;;  %v1205_v40 = vshrl.u32 %v5995_v3, %v1202_v0  ;;  %v1207_v41 = vshll.u32 %v5995_v3, %v1201_v2 }
  0x7b   : > { %v1365_v37 = vshrl.u32 %v1347_v22, %v1363_v30  ;;  %v1368_v38 = vadd.s32 127, %v1367_v31  ;;  %v1208_v42 = vshrl.u32 %v5996_v5, %v1202_v0  ;;  %v1213_v45 = vshll.u32 %v5997_v11, %v1201_v2 }
  0x7c   : > { %v1167_v50 = vxor.u32 2147483648, %v1166_v23  ;;  %v6482_v39 = vshrl.u32 %v1040_v34, 30  ;;  %v1214_v47 = vshrl.u32 %v5998_v14, %v1202_v0  ;;  %v1210_v35 = vshll.u32 %v5996_v5, %v1201_v2 }
  0x7d   : > { %v1366_v57 = vor.u32 %v1365_v37, %v1364_v43  ;;  %v1369_v55 = vshll.u32 %v1368_v38, 23  ;;  %v1211_v53 = vshrl.u32 %v5997_v11, %v1202_v0  ;;  %v1216_v51 = vshll.u32 %v5998_v14, %v1201_v2 }
  0x7e   : > { %v1168_v44 = vsel %vm1085_vm14, %v1167_v50, %v1166_v23  ;;  %v1042_v52 = vshll.u32 %v6482_v39, 30  ;;  %v1217_v4 = vshrl.u32 %v5999_v19, %v1202_v0  ;;  %v1215_v8 = vor.u32 %v1214_v47, %v1213_v45 }
  0x7f   : > { %v1171_v49 = vsel %vm6400_vm3, %v6232_v26, %v1168_v44  ;;  %v1370_v60 = vor.u32 4788187, %v1369_v55  ;;  %v1373_v63 = vcvt.s32.f32 %v1366_v57  ;;  %vm1179_vm13 = vcmp.eq.s32.totalorder %v6464_v21, 0 }
  0x80   : > { %5896 = vcosq.f32 %v1171_v49  ;;  %v6494_v58 = vsub.s32 %v1039_v29, %v1042_v52  ;;  %vm1182_vm14 = vcmp.eq.s32.totalorder %v6464_v21, 2  ;;  %v1384_v9 = vadd.s32 3, %v6471_v33 }
  0x81   : > { %5898 = vsinq.f32 %v1171_v49  ;;  %v1371_v6 = vand.u32 2147483647, %v1370_v60  ;;  %v1206_v10 = vor.u32 %v1205_v40, %v1204_v36  ;;  %vm1178_vm15 = vcmp.lt.s32.totalorder %v6464_v21, 2 }
  0x82   : > { %v1045_v2 = vsub.s32 0, %v6494_v58  ;;  %v1209_v12 = vor.u32 %v1208_v42, %v1207_v41  ;;  %v1212_v13 = vor.u32 %v1211_v53, %v1210_v35  ;;  %vm1222_vm2 = vcmp.lt.s32.totalorder %v6456_v16, 4 }
  0x83   : > { %vm1175_vm3 = vweird.f32 %v6232_v26  ;;  %v1374_v62 = vmul.f32 %v1373_v63, %v1371_v6  ;;  %v1195_v54 = vor.u32 8388608, %v1194_v46  ;;  %v1218_v7 = vor.u32 %v1217_v4, %v1216_v51 }
  0x84   : > { %vm1219_vm4 = vcmp.lt.s32.totalorder %v6456_v16, 1  ;;  %v5429_v17 = vmin.u32 %v1045_v2, %v6494_v58  ;;  %v1203_v22 = vshrl.u32 %v5994_v1, %v1202_v0  ;;  %vm1221_vm5 = vcmp.lt.s32.totalorder %v6456_v16, 3 }
  0x85   : > { %v1228_v18 = vsel %vm1222_vm2, %v1215_v8, 920167782  ;;  %v1375_v23 = vxor.u32 2147483648, %v1374_v62  ;;  %v1035_v25 = vadd.s32 %v6444_v61, %v6439_v56  ;;  %v1065_v29 = vsub.s32 4, %v6482_v39 }
  0x86   : > { %vm1220_vm6 = vcmp.lt.s32.totalorder %v6456_v16, 2  ;;  %v1047_v30 = vclz %v5429_v17  ;;  %v1224_v43 = vsel %vm1222_vm2, %v1212_v13, 2102212464  ;;  %v1227_v0 = vsel %vm1219_vm4, %v1206_v10, %v1209_v12 }
  0x87   : > { %v1231_v31 = vsel %vm1219_vm4, %v1209_v12, %v1212_v13  ;;  %v1376_v46 = vsel %vm1293_vm9, %v1375_v23, %v1374_v62  ;;  %v1229_v56 = vsel %vm1221_vm5, %v1212_v13, %v1228_v18  ;;  %v1232_v61 = vsel %vm1222_vm2, %v1218_v7, 1326507024 }
  0x88   : > { %v1235_v50 = vshll.u32 %v1195_v54, 8  ;;  %v1379_v36 = vsel %vm6460_vm11, %v6235_v27, %v1376_v46  ;;  %v5430_v40 = vadd.s32 4294967294, %v1047_v30  ;;  %v1223_v37 = vsel %vm1219_vm4, %v1203_v22, %v1206_v10 }
  0x89   : > { %v1233_v38 = vsel %vm1221_vm5, %v1215_v8, %v1232_v61  ;;  %5900 = vcosq.f32 %v1379_v36  ;;  %v1225_v44 = vsel %vm1221_vm5, %v1209_v12, %v1224_v43  ;;  %v1230_v47 = vsel %vm1220_vm6, %v1227_v0, %v1229_v56 }
  0x8a   : > { %v6525_v34 = vpop.eup %5896  ;;  %v1234_v45 = vsel %vm1220_vm6, %v1231_v31, %v1233_v38  ;;  %5902 = vsinq.f32 %v1379_v36  ;;  %vm5431_vm7 = vcmp.lt.s32.totalorder %v5430_v40, 0  ;;  %v1226_v4 = vsel %vm1220_vm6, %v1223_v37, %v1225_v44 }
  0x8b   : > { %v6534_v41 = vpop.eup %5898  ;;  %v1183_v42 = vxor.u32 2147483648, %v6525_v34  ;;  %v1050_v57 = vsel %vm5431_vm7, 0, %v5430_v40  ;;  %v6549_v55 = vmul.u32.u64.low %v1235_v50, %v1234_v45  ;;  %v6550_v35 = vmul.u32.u64.high %v1235_v50, %v1234_v45, %v6549_v55 }
  0x8c   : > { %v1180_v20 = vxor.u32 2147483648, %v6534_v41  ;;  %v1051_v53 = vsub.s32 32, %v1050_v57  ;;  %v1052_v51 = vshll.u32 %v6494_v58, %v1050_v57  ;;  %v1055_v60 = vsub.s32 4294967266, %v1050_v57 }
  0x8d   : > { %v1184_v49 = vsel %vm1182_vm14, %v1183_v42, %v6534_v41  ;;  %v6562_v8 = vmul.u32.u64.low %v1235_v50, %v1230_v47  ;;  %v6563_v6 = vmul.u32.u64.high %v1235_v50, %v1230_v47, %v6562_v8  ;;  %vm981_vm8 = vcmp.lt.s32.totalorder %v6238_v28, 0 }
  0x8e   : > { %v1181_v52 = vsel %vm1179_vm13, %v6525_v34, %v1180_v20  ;;  %v1053_v2 = vshrl.u32 %v1035_v25, %v1051_v53  ;;  %v1056_v12 = vadd.s32 127, %v1055_v60  ;;  %v1385_v58 = vand.u32 3, %v1384_v9 }
  0x8f   : > { %v1185_v63 = vsel %vm1178_vm15, %v1181_v52, %v1184_v49  ;;  %v1066_v21 = vsel %vm981_vm8, %v1065_v29, %v6482_v39  ;;  %v1242_v62 = vmul.u32 %v1235_v50, %v1226_v4  ;;  %vm1244_vm9 = vc.u32 %v6550_v35, %v6562_v8 }
  0x90   : > { %v1186_v10 = vsel %vm1175_vm3, nan, %v1185_v63  ;;  %v1054_v16 = vor.u32 %v1053_v2, %v1052_v51  ;;  %v1057_v13 = vshll.u32 %v1056_v12, 23  ;;  %v1245_v54 = vadd.s32 1, %v6563_v6 }
  0x91   : > { %5444 = vmatprep.subr.msk.mxu0 %vm788_vm0, %v1186_v10  ;;  %vm6578_vm10 = vcmp.le.f32.partialorder %v979_v59, 0.7853982  ;;  %vm1390_vm11 = vcmp.eq.s32.totalorder %v1385_v58, 2  ;;  %v1813_v23 = vand.u32 3, %v6433_v48  ;;  %vm1387_vm12 = vcmp.eq.s32.totalorder %v1385_v58, 0 }
  0x92   : > { %v1058_v17 = vor.u32 4788187, %v1057_v13  ;;  %v1061_v9 = vcvt.s32.f32 %v1054_v16  ;;  %v1068_v39 = vsel %vm6578_vm10, 0, %v1066_v21  ;;  %v1246_v18 = vsel %vm1244_vm9, %v1245_v54, %v6563_v6 }
  0x93   : > { %v6582_v22 = vpop.eup %5900  ;;  %v1247_v30 = vadd.s32 %v1246_v18, %v1242_v62  ;;  %vm7623_vm13 = vweird.f32 %v6235_v27  ;;  %vm1386_vm14 = vcmp.lt.s32.totalorder %v1385_v58, 2  ;;  %v6591_v0 = vmul.f32 2.0, %v6232_v26 }
  0x94   : > { %v5903_v25 = vpop.eup %5902  ;;  %v1391_v29 = vxor.u32 2147483648, %v6582_v22  ;;  %v1059_v59 = vand.u32 2147483647, %v1058_v17  ;;  %v1072_v56 = vadd.s32 3, %v1068_v39  ;;  %vm1189_vm15 = vcmp.lt.s32.totalorder %v6248_v32, 0 }
  0x95   : > { %v1388_v43 = vxor.u32 2147483648, %v5903_v25  ;;  %v1248_v61 = vadd.s32 536870912, %v1247_v30  ;;  %vm1815_vm2 = vcmp.eq.s32.totalorder %v1813_v23, 0  ;;  %vm1818_vm4 = vcmp.eq.s32.totalorder %v1813_v23, 2 }
  0x96   : > { %v1392_v31 = vsel %vm1390_vm11, %v1391_v29, %v5903_v25  ;;  %v1062_v46 = vmul.f32 %v1061_v9, %v1059_v59  ;;  %vm6599_vm5 = vcmp.le.f32.partialorder %v1187_v15, 0.7853982  ;;  %v2019_v44 = vand.u32 3, %v6471_v33 }
  0x97   : > { %v1389_v50 = vsel %vm1387_vm12, %v6582_v22, %v1388_v43  ;;  %v1249_v40 = vshrl.u32 %v1248_v61, 30  ;;  %v2359_v45 = vand.u32 2147483647, %v6591_v0  ;;  %v2362_v47 = vand.u32 2139095040, %v6591_v0 }
  0x98   : > { %v1393_v48 = vsel %vm1386_vm14, %v1389_v50, %v1392_v31  ;;  %v1063_v36 = vxor.u32 2147483648, %v1062_v46  ;;  %v6609_v57 = vand.u32 3, %v1072_v56  ;;  %vm1814_vm6 = vcmp.lt.s32.totalorder %v1813_v23, 2 }
  0x99   : > { %v1394_v37 = vsel %vm7623_vm13, nan, %v1393_v48  ;;  %v1250_v55 = vshll.u32 %v1249_v40, 30  ;;  %v1273_v52 = vsub.s32 4, %v1249_v40  ;;  %v2363_v53 = vshrl.u32 %v2362_v47, 23 }
  0x9a   : > { %5450 = vmatprep.subr.msk.mxu1 %vm788_vm0, %v1394_v37  ;;  %v1064_v49 = vsel %vm981_vm8, %v1063_v36, %v1062_v46  ;;  %v6615_v33 = vmul.f32 2.0, %v6235_v27  ;;  %v1817_v60 = vsel %vm1815_vm2, %v6525_v34, %v1180_v20  ;;  %v1820_v63 = vsel %vm1818_vm4, %v1183_v42, %v6534_v41 }
  0x9b   : > { %v1067_v15 = vsel %vm6578_vm10, %v6238_v28, %v1064_v49  ;;  %v6617_v51 = vsub.s32 %v1247_v30, %v1250_v55  ;;  %vm2024_vm7 = vcmp.eq.s32.totalorder %v2019_v44, 2  ;;  %v5488_v4 = vadd.s32 4294967169, %v2363_v53 }
  0x9c   : > { %5904 = vcosq.f32 %v1067_v15  ;;  %v2366_v6 = vand.u32 8388607, %v2359_v45  ;;  %vm1078_vm8 = vcmp.eq.s32.totalorder %v6609_v57, 2  ;;  %vm2021_vm9 = vcmp.eq.s32.totalorder %v2019_v44, 0 }
  0x9d   : > { %5906 = vsinq.f32 %v1067_v15  ;;  %v1253_v10 = vsub.s32 0, %v6617_v51  ;;  %v1710_v2 = vand.u32 3, %v1068_v39  ;;  %vm1075_vm10 = vcmp.eq.s32.totalorder %v6609_v57, 0 }
  0x9e   : > { %v1274_v20 = vsel %vm1189_vm15, %v1273_v52, %v1249_v40  ;;  %v1821_v34 = vsel %vm1814_vm6, %v1817_v60, %v1820_v63  ;;  %v2369_v41 = vadd.s32 1, %v5488_v4  ;;  %v2570_v42 = vand.u32 2139095040, %v6615_v33  ;;  %v6680_v4 = vld [vmem:[%s7652_s30] sm:$0xff] }
  0x9f   : > { %vm1074_vm11 = vcmp.lt.s32.totalorder %v6609_v57, 2  ;;  %v1243_v12 = vadd.s32 %v6562_v8, %v6550_v35  ;;  %v5437_v58 = vmin.u32 %v1253_v10, %v6617_v51  ;;  %vm2020_vm12 = vcmp.lt.s32.totalorder %v2019_v44, 2 }
  0xa0   : > { %v2026_v21 = vsel %vm2024_vm7, %v1391_v29, %v5903_v25  ;;  %vm1071_vm14 = vweird.f32 %v6238_v28  ;;  %v2023_v16 = vsel %vm2021_vm9, %v6582_v22, %v1388_v43  ;;  %v2367_v13 = vor.u32 8388608, %v2366_v6 }
  0xa1   : > { %vm2370_vm2 = vcmp.gt.s32.totalorder %v2369_v41, 0  ;;  %v2571_v62 = vshrl.u32 %v2570_v42, 23  ;;  %v1255_v54 = vclz %v5437_v58  ;;  %v6645_v7 = vsel %vm6599_vm5, 0, %v1274_v20 }
  0xa2   : > { %v1822_v35 = vsel %vm1175_vm3, nan, %v1821_v34  ;;  %vm1711_vm4 = vcmp.lt.s32.totalorder %v1710_v2, 2  ;;  %vm1712_vm6 = vcmp.eq.s32.totalorder %v1710_v2, 0  ;;  %vm1715_vm13 = vcmp.eq.s32.totalorder %v1710_v2, 2 }
  0xa3   : > { %v2371_v8 = vsel %vm2370_vm2, %v2369_v41, 0  ;;  %v5496_v17 = vadd.s32 4294967169, %v2571_v62  ;;  %v5438_v9 = vadd.s32 4294967294, %v1255_v54  ;;  %v6650_v39 = vsel %vm2020_vm12, %v2023_v16, %v2026_v21  ;;  %v6701_v54 = vld [vmem:[%s7652_s30 + $0x8] sm:$0xff] }
  0xa4   : > { %v2373_v22 = vand.u32 31, %v2371_v8  ;;  %v2567_v18 = vand.u32 2147483647, %v6615_v33  ;;  %v6654_v23 = vadd.s32 3, %v6645_v7  ;;  %v6656_v25 = vshrl.u32 %v2371_v8, 5 }
  0xa5   : > { %v6658_v29 = vshll.u32 %v2367_v13, 8  ;;  %v6660_v26 = vadd.s32 1, %v5496_v17  ;;  %vm5439_vm3 = vcmp.lt.s32.totalorder %v5438_v9, 0 }
  0xa6   : > { %v5905_v59 = vpop.eup %5904  ;;  %v2374_v30 = vsub.s32 32, %v2373_v22  ;;  %v2376_v43 = vshll.u32 %v5994_v1, %v2373_v22  ;;  %v2379_v31 = vshll.u32 %v5995_v3, %v2373_v22  ;;  %v1258_v61 = vsel %vm5439_vm3, 0, %v5438_v9 }
  0xa7   : > { %v5907_v46 = vpop.eup %5906  ;;  %v1079_v56 = vxor.u32 2147483648, %v5905_v59  ;;  %v2382_v50 = vshll.u32 %v5996_v5, %v2373_v22  ;;  %v2385_v48 = vshll.u32 %v5997_v11, %v2373_v22  ;;  %v1259_v40 = vsub.s32 32, %v1258_v61 }
  0xa8   : > { %v1076_v36 = vxor.u32 2147483648, %v5907_v46  ;;  %v1260_v37 = vshll.u32 %v6617_v51, %v1258_v61  ;;  %v1263_v44 = vsub.s32 4294967266, %v1258_v61  ;;  %v2375_v55 = vshrl.u32 %v5994_v1, %v2374_v30 }
  0xa9   : > { %v1080_v47 = vsel %vm1078_vm8, %v1079_v56, %v5907_v46  ;;  %v1717_v49 = vsel %vm1715_vm13, %v1079_v56, %v5907_v46  ;;  %v2377_v15 = vshrl.u32 %v5995_v3, %v2374_v30  ;;  %v1261_v53 = vshrl.u32 %v1243_v12, %v1259_v40 }
  0xaa   : > { %v1077_v52 = vsel %vm1075_vm10, %v5905_v59, %v1076_v36  ;;  %v1264_v60 = vadd.s32 127, %v1263_v44  ;;  %v1714_v63 = vsel %vm1712_vm6, %v5905_v59, %v1076_v36  ;;  %v2380_v20 = vshrl.u32 %v5996_v5, %v2374_v30 }
  0xab   : > { %v1081_v51 = vsel %vm1074_vm11, %v1077_v52, %v1080_v47  ;;  %v1718_v6 = vsel %vm1711_vm4, %v1714_v63, %v1717_v49  ;;  %v2378_v10 = vor.u32 %v2377_v15, %v2376_v43  ;;  %v1262_v41 = vor.u32 %v1261_v53, %v1260_v37 }
  0xac   : > { %v1082_v34 = vsel %vm1071_vm14, nan, %v1081_v51  ;;  %v1265_v42 = vshll.u32 %v1264_v60, 23  ;;  %v1719_v12 = vsel %vm1071_vm14, nan, %v1718_v6  ;;  %v2381_v57 = vor.u32 %v2380_v20, %v2379_v31 }
  0xad   : > { %5445 = vmatpush1.msk.msra.mxu0 %vm788_vm0, %v1082_v34  ;;  %v2383_v58 = vshrl.u32 %v5997_v11, %v2374_v30  ;;  %v2386_v21 = vshrl.u32 %v5998_v14, %v2374_v30  ;;  %v2388_v2 = vshll.u32 %v5998_v14, %v2373_v22  ;;  %v1269_v13 = vcvt.s32.f32 %v1262_v41 }
  0xae   : > { %v1266_v16 = vor.u32 4788187, %v1265_v42  ;;  %5446 = vmatmul.mubr.msk.f32.vlgmr.msra.gmra.mrb[0].mxu0 %vm775_vm1, %v6680_v4  ;;  %5472 = vmatprep.subr.msk.mxu0 %vm788_vm0, %v1822_v35  ;;  %v2389_v62 = vshrl.u32 %v5999_v19, %v2374_v30  ;;  %vm2391_vm13 = vcmp.lt.s32.totalorder %v6656_v25, 1  ;;  %vm2392_vm7 = vcmp.lt.s32.totalorder %v6656_v25, 2 }
  0xaf   : > { %1493 = vmatprep.mubr.f32.mxu0 %v5993_v24  ;;  %5473 = vmatpush1.msk.msra.mxu0 %vm788_vm0, %v1719_v12  ;;  %v2384_v8 = vor.u32 %v2383_v58, %v2382_v50  ;;  %v2387_v17 = vor.u32 %v2386_v21, %v2385_v48  ;;  %vm2393_vm8 = vcmp.lt.s32.totalorder %v6656_v25, 3  ;;  %vm2394_vm9 = vcmp.lt.s32.totalorder %v6656_v25, 4  ;;  %v6717_v48 = vld [vmem:[%s7652_s30 + $0x10] sm:$0xff]  ;;  %v6789_v12 = vld [vmem:[%s7654_s1] sm:$0xff] }
  0xb0   : > { %v1267_v35 = vand.u32 2147483647, %v1266_v16  ;;  %v2390_v9 = vor.u32 %v2389_v62, %v2388_v2  ;;  %v2395_v22 = vsel %vm2391_vm13, %v2375_v55, %v2378_v10  ;;  %v2399_v30 = vsel %vm2391_vm13, %v2378_v10, %v2381_v57 }
  0xb1   : > { %v2396_v59 = vsel %vm2394_vm9, %v2384_v8, 2102212464  ;;  %v2400_v43 = vsel %vm2394_vm9, %v2387_v17, 920167782  ;;  %v2403_v31 = vsel %vm2391_vm13, %v2381_v57, %v2384_v8  ;;  %vm2578_vm10 = vcmp.gt.s32.totalorder %v6660_v26, 0 }
  0xb2   : > { %v1270_v46 = vmul.f32 %v1269_v13, %v1267_v35  ;;  %5447 = vmatmul.mubr.msk.f32.gmra.mrb[2].mxu0 %vm775_vm1, %v6701_v54  ;;  %v2397_v56 = vsel %vm2393_vm8, %v2381_v57, %v2396_v59  ;;  %v2401_v61 = vsel %vm2393_vm8, %v2384_v8, %v2400_v43  ;;  %v2404_v50 = vsel %vm2394_vm9, %v2390_v9, 1326507024  ;;  %v6813_v43 = vld [vmem:[%s7654_s1 + $0x8] sm:$0xff] }
  0xb3   : > { %1499 = vmatprep.mubr.f32.mxu0 %v5993_v24  ;;  %v2398_v36 = vsel %vm2392_vm7, %v2395_v22, %v2397_v56  ;;  %v2402_v40 = vsel %vm2392_vm7, %v2399_v30, %v2401_v61  ;;  %v2405_v37 = vsel %vm2393_vm8, %v2387_v17, %v2404_v50  ;;  %v6739_v53 = vand.u32 8388607, %v2567_v18  ;;  %v6799_v17 = vld [vmem:[%s6229_s0 + $0x10] sm:$0x7] }
  0xb4   : > { %v1271_v44 = vxor.u32 2147483648, %v1270_v46  ;;  %v2406_v47 = vsel %vm2392_vm7, %v2403_v31, %v2405_v37  ;;  %v6729_v49 = vmul.u32.u64.low %v6658_v29, %v2402_v40  ;;  %v6730_v55 = vmul.u32.u64.high %v6658_v29, %v2402_v40, %v6729_v49 }
  0xb5   : > { %v6734_v15 = vmul.u32.u64.low %v6658_v29, %v2406_v47  ;;  %v6735_v52 = vmul.u32.u64.high %v6658_v29, %v2406_v47, %v6734_v15  ;;  %v2579_v60 = vsel %vm2578_vm10, %v6660_v26, 0  ;;  %v6747_v25 = vand.u32 3, %v6645_v7  ;;  %v6762_v26 = vld [vmem:[%s7652_s30 + $0x18] sm:$0xff] }
  0xb6   : > { %v1272_v63 = vsel %vm1189_vm15, %v1271_v44, %v1270_v46  ;;  %5448 = vmatmul.mubr.msk.f32.gmra.mrb[4].mxu0 %vm775_vm1, %v6717_v48  ;;  %v2581_v51 = vand.u32 31, %v2579_v60  ;;  %v6750_v6 = vmul.f32 2.0, %v6238_v28  ;;  %v6756_v20 = vand.u32 3, %v6654_v23 }
  0xb7   : > { %v1275_v10 = vsel %vm6599_vm5, %v6248_v32, %v1272_v63  ;;  %1505 = vmatprep.mubr.f32.mxu0 %v5993_v24  ;;  %vm7653_vm15 = vweird.f32 %v6235_v27  ;;  %v2414_v28 = vmul.u32 %v6658_v29, %v2398_v36  ;;  %v2417_v32 = vadd.s32 1, %v6730_v55 }
  0xb8   : > { %v6767_v7 = vsel %vm7653_vm15, nan, %v6650_v39  ;;  %5908 = vcosq.f32 %v1275_v10  ;;  %v2582_v38 = vsub.s32 32, %v2581_v51  ;;  %v2584_v23 = vshll.u32 %v5994_v1, %v2581_v51 }
  0xb9   : > { %5910 = vsinq.f32 %v1275_v10  ;;  %vm2416_vm5 = vc.u32 %v6735_v52, %v6729_v49  ;;  %v2575_v34 = vor.u32 8388608, %v6739_v53  ;;  %v2587_v41 = vshll.u32 %v5995_v3, %v2581_v51 }
  0xba   : > { %5449 = vmatmul.mubr.msk.f32.gmra.mrb[6].mxu0 %vm775_vm1, %v6762_v26  ;;  %vm1921_vm11 = vcmp.eq.s32.totalorder %v6747_v25, 2  ;;  %v2418_v27 = vsel %vm2416_vm5, %v2417_v32, %v6730_v55  ;;  %v6780_v39 = vshrl.u32 %v2579_v60, 5  ;;  %v2585_v29 = vshrl.u32 %v5995_v3, %v2582_v38 }
  0xbb   : > { %v2588_v42 = vshrl.u32 %v5996_v5, %v2582_v38  ;;  %2121 = vmatprep.mubr.f32.mxu0 %v5993_v24  ;;  %vm1918_vm12 = vcmp.eq.s32.totalorder %v6747_v25, 0  ;;  %v2419_v57 = vadd.s32 %v2418_v27, %v2414_v28  ;;  %v2590_v58 = vshll.u32 %v5996_v5, %v2581_v51 }
  0xbc   : > { %v2591_v21 = vshrl.u32 %v5997_v11, %v2582_v38  ;;  %v2593_v2 = vshll.u32 %v5997_v11, %v2581_v51  ;;  %vm1917_vm14 = vcmp.lt.s32.totalorder %v6747_v25, 2  ;;  %v2586_v16 = vor.u32 %v2585_v29, %v2584_v23  ;;  %v6890_v25 = vld [vmem:[%s7654_s1 + $0x18] sm:$0xff] }
  0xbd   : > { %v2594_v13 = vshrl.u32 %v5998_v14, %v2582_v38  ;;  %v2596_v62 = vshll.u32 %v5998_v14, %v2581_v51  ;;  %v2258_v8 = vand.u32 2139095040, %v6750_v6  ;;  %vm1279_vm2 = vweird.f32 %v6799_v17  ;;  %v6842_v51 = vld [vmem:[%s7654_s1 + $0x10] sm:$0xff]  ;;  %s7666_s1 = sadd.s32 4294967295, %s5991_s27  }
  0xbe   : > { %v2420_v35 = vadd.s32 536870912, %v2419_v57  ;;  %v2589_v9 = vor.u32 %v2588_v42, %v2587_v41  ;;  %v2592_v22 = vor.u32 %v2591_v21, %v2590_v58  ;;  %v2597_v59 = vshrl.u32 %v5999_v19, %v2582_v38  ;;  %5474 = vmatmul.mubr.msk.f32.vlgmr.msra.gmra.mrb[0].mxu0 %vm775_vm1, %v6789_v12  ;;  %s5604_s23 = sshll.u32 %s7666_s1, 8  ;;  %s6001_s1 = smov [#allocation3]  }
  0xbf   : > { %v2595_v30 = vor.u32 %v2594_v13, %v2593_v2  ;;  %vm2599_vm4 = vcmp.lt.s32.totalorder %v6780_v39, 1  ;;  %vm2601_vm6 = vcmp.lt.s32.totalorder %v6780_v39, 3  ;;  %vm2602_vm3 = vcmp.lt.s32.totalorder %v6780_v39, 4  ;;  %2127 = vmatprep.mubr.f32.mxu0 %v5993_v24 }
  0xc0   : > { %vm1282_vm13 = vcmp.lt.s32.totalorder %v6756_v20, 2  ;;  %v6815_v31 = vshrl.u32 %v2420_v35, 30  ;;  %v2583_v46 = vshrl.u32 %v5994_v1, %v2582_v38  ;;  %v2598_v56 = vor.u32 %v2597_v59, %v2596_v62 }
  0xc1   : > { %vm2600_vm7 = vcmp.lt.s32.totalorder %v6780_v39, 2  ;;  %v2604_v61 = vsel %vm2602_vm3, %v2592_v22, 2102212464  ;;  %v2608_v50 = vsel %vm2602_vm3, %v2595_v30, 920167782  ;;  %v2259_v36 = vshrl.u32 %v2258_v8, 23 }
  0xc2   : > { %v2422_v40 = vshll.u32 %v6815_v31, 30  ;;  %v2607_v37 = vsel %vm2599_vm4, %v2586_v16, %v2589_v9  ;;  %v2609_v44 = vsel %vm2601_vm6, %v2592_v22, %v2608_v50  ;;  %v2611_v47 = vsel %vm2599_vm4, %v2589_v9, %v2592_v22  ;;  %v5909_v55 = vpop.eup %5908  ;;  %5475 = vmatmul.mubr.msk.f32.gmra.mrb[2].mxu0 %vm775_vm1, %v6813_v43 }
  0xc3   : > { %vm1283_vm8 = vcmp.eq.s32.totalorder %v6756_v20, 0  ;;  %vm1286_vm9 = vcmp.eq.s32.totalorder %v6756_v20, 2  ;;  %v2612_v15 = vsel %vm2602_vm3, %v2598_v56, 1326507024  ;;  %v6836_v53 = vshll.u32 %v2575_v34, 8  ;;  %v5911_v60 = vpop.eup %5910  ;;  %2133 = vmatprep.mubr.f32.mxu0 %v5993_v24 }
  0xc4   : > { %v1287_v63 = vxor.u32 2147483648, %v5909_v55  ;;  %v6844_v10 = vsub.s32 %v2419_v57, %v2422_v40  ;;  %v2603_v28 = vsel %vm2599_vm4, %v2583_v46, %v2586_v16  ;;  %v2613_v32 = vsel %vm2601_vm6, %v2595_v30, %v2612_v15 }
  0xc5   : > { %v1284_v38 = vxor.u32 2147483648, %v5911_v60  ;;  %v2605_v23 = vsel %vm2601_vm6, %v2589_v9, %v2604_v61  ;;  %v2610_v34 = vsel %vm2600_vm7, %v2607_v37, %v2609_v44  ;;  %v2614_v41 = vsel %vm2600_vm7, %v2611_v47, %v2613_v32 }
  0xc6   : > { %v1288_v27 = vsel %vm1286_vm9, %v1287_v63, %v5911_v60  ;;  %v1923_v29 = vsel %vm1921_vm11, %v1287_v63, %v5911_v60  ;;  %v2425_v42 = vsub.s32 0, %v6844_v10  ;;  %v5484_v57 = vadd.s32 4294967169, %v2259_v36  ;;  %5476 = vmatmul.mubr.msk.f32.gmra.mrb[4].mxu0 %vm775_vm1, %v6842_v51 }
  0xc7   : > { %v1285_v58 = vsel %vm1283_vm8, %v5909_v55, %v1284_v38  ;;  %v1920_v21 = vsel %vm1918_vm12, %v5909_v55, %v1284_v38  ;;  %v6866_v2 = vmul.u32.u64.low %v6836_v53, %v2614_v41  ;;  %v6867_v16 = vmul.u32.u64.high %v6836_v53, %v2614_v41, %v6866_v2  ;;  %2139 = vmatprep.mubr.f32.mxu0 %v5993_v24 }
  0xc8   : > { %v1289_v13 = vsel %vm1282_vm13, %v1285_v58, %v1288_v27  ;;  %v1924_v62 = vsel %vm1917_vm14, %v1920_v21, %v1923_v29  ;;  %v5489_v8 = vmin.u32 %v2425_v42, %v6844_v10  ;;  %v2606_v35 = vsel %vm2600_vm7, %v2603_v28, %v2605_v23 }
  0xc9   : > { %v1290_v9 = vsel %vm1279_vm2, nan, %v1289_v13  ;;  %v1925_v22 = vsel %vm1279_vm2, nan, %v1924_v62  ;;  %v6882_v59 = vmul.u32.u64.low %v6836_v53, %v2610_v34  ;;  %v6883_v20 = vmul.u32.u64.high %v6836_v53, %v2610_v34, %v6882_v59 }
  0xca   : > { %5451 = vmatpush1.msk.msra.mxu1 %vm788_vm0, %v1290_v9  ;;  %v2427_v39 = vclz %v5489_v8  ;;  %v2445_v30 = vsub.s32 4, %v6815_v31  ;;  %v2265_v46 = vadd.s32 1, %v5484_v57  ;;  %v2622_v61 = vmul.u32 %v6836_v53, %v2606_v35  ;;  %5477 = vmatmul.mubr.msk.f32.gmra.mrb[6].mxu0 %vm775_vm1, %v6890_v25 }
  0xcb   : > { %5452 = vmatmul.mubr.msk.f32.vlgmr.msra.gmra.mrb[0].mxu1 %vm775_vm1, %v6680_v4  ;;  %5478 = vmatprep.subr.msk.mxu1 %vm788_vm0, %v6767_v7  ;;  %vm2624_vm10 = vc.u32 %v6867_v16, %v6882_v59  ;;  %v6903_v50 = vmul.f32 2.0, %v6799_v17  ;;  %vm2361_vm15 = vcmp.lt.s32.totalorder %v6591_v0, 0  ;;  %v2625_v4 = vadd.s32 1, %v6883_v20 }
  0xcc   : > { %1582 = vmatprep.mubr.f32.mxu1 %v5993_v24  ;;  %5479 = vmatpush1.msk.msra.mxu1 %vm788_vm0, %v1925_v22  ;;  %v5490_v56 = vadd.s32 4294967294, %v2427_v39  ;;  %v2255_v7 = vand.u32 2147483647, %v6750_v6  ;;  %vm2266_vm5 = vcmp.gt.s32.totalorder %v2265_v46, 0  ;;  %v2415_v36 = vadd.s32 %v6729_v49, %v6735_v52 }
  0xcd   : > { %v2446_v40 = vsel %vm2361_vm15, %v2445_v30, %v6815_v31  ;;  %v2267_v17 = vsel %vm2266_vm5, %v2265_v46, 0  ;;  %2763 = vmatprep.mubr.f32.mxu0 %v5993_v24  ;;  %vm6920_vm12 = vcmp.le.f32.partialorder %v2359_v45, 0.7853982  ;;  %v2626_v49 = vsel %vm2624_vm10, %v2625_v4, %v6883_v20 }
  0xce   : > { %vm5491_vm11 = vcmp.lt.s32.totalorder %v5490_v56, 0  ;;  %v2269_v52 = vand.u32 31, %v2267_v17  ;;  %v2627_v15 = vadd.s32 %v2626_v49, %v2622_v61  ;;  %v2262_v45 = vand.u32 8388607, %v2255_v7 }
  0xcf   : > { %5453 = vmatmul.mubr.msk.f32.gmra.mrb[2].mxu1 %vm775_vm1, %v6701_v54  ;;  %v2430_v44 = vsel %vm5491_vm11, 0, %v5490_v56  ;;  %v6929_v54 = vsel %vm6920_vm12, 0, %v2446_v40  ;;  %v2466_v60 = vand.u32 2139095040, %v6903_v50  ;;  %v2268_v58 = vshrl.u32 %v2267_v17, 5 }
  0xd0   : > { %1588 = vmatprep.mubr.f32.mxu1 %v5993_v24  ;;  %v2431_v47 = vsub.s32 32, %v2430_v44  ;;  %v2432_v31 = vshll.u32 %v6844_v10, %v2430_v44  ;;  %v2435_v55 = vsub.s32 4294967266, %v2430_v44  ;;  %v2270_v53 = vsub.s32 32, %v2269_v52 }
  0xd1   : > { %v2628_v32 = vadd.s32 536870912, %v2627_v15  ;;  %v2272_v38 = vshll.u32 %v5994_v1, %v2269_v52  ;;  %v2275_v23 = vshll.u32 %v5995_v3, %v2269_v52  ;;  %v2281_v41 = vshll.u32 %v5997_v11, %v2269_v52 }
  0xd2   : > { %v2433_v63 = vshrl.u32 %v2415_v36, %v2431_v47  ;;  %v2436_v28 = vadd.s32 127, %v2435_v55  ;;  %v2273_v10 = vshrl.u32 %v5995_v3, %v2270_v53  ;;  %v2276_v34 = vshrl.u32 %v5996_v5, %v2270_v53 }
  0xd3   : > { %5454 = vmatmul.mubr.msk.f32.gmra.mrb[4].mxu1 %vm775_vm1, %v6717_v48  ;;  %v6942_v42 = vshrl.u32 %v2628_v32, 30  ;;  %v2282_v57 = vshrl.u32 %v5998_v14, %v2270_v53  ;;  %v2278_v21 = vshll.u32 %v5996_v5, %v2269_v52  ;;  %v2279_v48 = vshrl.u32 %v5997_v11, %v2270_v53 }
  0xd4   : > { %1594 = vmatprep.mubr.f32.mxu1 %v5993_v24  ;;  %v2434_v27 = vor.u32 %v2433_v63, %v2432_v31  ;;  %v2437_v29 = vshll.u32 %v2436_v28, 23  ;;  %v2284_v2 = vshll.u32 %v5998_v14, %v2269_v52  ;;  %v2263_v35 = vor.u32 8388608, %v2262_v45 }
  0xd5   : > { %v2630_v8 = vshll.u32 %v6942_v42, 30  ;;  %v2452_v9 = vadd.s32 3, %v6929_v54  ;;  %v2283_v22 = vor.u32 %v2282_v57, %v2281_v41  ;;  %v2285_v20 = vshrl.u32 %v5999_v19, %v2270_v53 }
  0xd6   : > { %v2438_v13 = vor.u32 4788187, %v2437_v29  ;;  %v2441_v62 = vcvt.s32.f32 %v2434_v27  ;;  %v2467_v39 = vshrl.u32 %v2466_v60, 23  ;;  %v2274_v56 = vor.u32 %v2273_v10, %v2272_v38 }
  0xd7   : > { %5455 = vmatmul.mubr.msk.f32.gmra.mrb[6].mxu1 %vm775_vm1, %v6762_v26  ;;  %v6954_v46 = vsub.s32 %v2627_v15, %v2630_v8  ;;  %v2277_v61 = vor.u32 %v2276_v34, %v2275_v23  ;;  %v2280_v4 = vor.u32 %v2279_v48, %v2278_v21  ;;  %v2286_v36 = vor.u32 %v2285_v20, %v2284_v2 }
  0xd8   : > { %2210 = vmatprep.mubr.f32.mxu1 %v5993_v24  ;;  %v2439_v30 = vand.u32 2147483647, %v2438_v13  ;;  %vm2287_vm14 = vcmp.lt.s32.totalorder %v2268_v58, 1  ;;  %vm2290_vm2 = vcmp.lt.s32.totalorder %v2268_v58, 4  ;;  %v2271_v17 = vshrl.u32 %v5994_v1, %v2270_v53 }
  0xd9   : > { %v2633_v26 = vsub.s32 0, %v6954_v46  ;;  %vm2289_vm4 = vcmp.lt.s32.totalorder %v2268_v58, 3  ;;  %v6960_v44 = vand.u32 3, %v2452_v9  ;;  %vm2288_vm6 = vcmp.lt.s32.totalorder %v2268_v58, 2 }
  0xda   : > { %v2442_v40 = vmul.f32 %v2441_v62, %v2439_v30  ;;  %v2296_v49 = vsel %vm2290_vm2, %v2283_v22, 920167782  ;;  %v6963_v52 = vshll.u32 %v2263_v35, 8  ;;  %v2292_v55 = vsel %vm2290_vm2, %v2280_v4, 2102212464 }
  0xdb   : > { %5480 = vmatmul.mubr.msk.f32.vlgmr.msra.gmra.mrb[0].mxu1 %vm775_vm1, %v6789_v12  ;;  %v5497_v31 = vmin.u32 %v2633_v26, %v6954_v46  ;;  %v2295_v15 = vsel %vm2287_vm14, %v2274_v56, %v2277_v61  ;;  %v2297_v45 = vsel %vm2289_vm4, %v2280_v4, %v2296_v49  ;;  %v2299_v12 = vsel %vm2287_vm14, %v2277_v61, %v2280_v4 }
  0xdc   : > { %2216 = vmatprep.mubr.f32.mxu1 %v5993_v24  ;;  %v2443_v47 = vxor.u32 2147483648, %v2442_v40  ;;  %v2300_v53 = vsel %vm2290_vm2, %v2286_v36, 1326507024  ;;  %v5492_v60 = vadd.s32 4294967169, %v2467_v39  ;;  %v2623_v28 = vadd.s32 %v6882_v59, %v6867_v16 }
  0xdd   : > { %v2635_v32 = vclz %v5497_v31  ;;  %v2291_v38 = vsel %vm2287_vm14, %v2271_v17, %v2274_v56  ;;  %vm6984_vm3 = vcmp.le.f32.partialorder %v2567_v18, 0.7853982  ;;  %v2293_v34 = vsel %vm2289_vm4, %v2277_v61, %v2292_v55 }
  0xde   : > { %v2444_v63 = vsel %vm2361_vm15, %v2443_v47, %v2442_v40  ;;  %v2298_v16 = vsel %vm2288_vm6, %v2295_v15, %v2297_v45  ;;  %v2301_v59 = vsel %vm2289_vm4, %v2283_v22, %v2300_v53  ;;  %v2653_v41 = vsub.s32 4, %v6942_v42 }
  0xdf   : > { %5481 = vmatmul.mubr.msk.f32.gmra.mrb[2].mxu1 %vm775_vm1, %v6813_v43  ;;  %v2447_v10 = vsel %vm6920_vm12, %v6591_v0, %v2444_v63  ;;  %v5498_v43 = vadd.s32 4294967294, %v2635_v32  ;;  %v2302_v37 = vsel %vm2288_vm6, %v2299_v12, %v2301_v59  ;;  %v2473_v29 = vadd.s32 1, %v5492_v60 }
  0xe0   : > { %2222 = vmatprep.mubr.f32.mxu1 %v5993_v24  ;;  %5912 = vcosq.f32 %v2447_v10  ;;  %v6995_v18 = vmul.u32.u64.low %v6963_v52, %v2302_v37  ;;  %v6996_v27 = vmul.u32.u64.high %v6963_v52, %v2302_v37, %v6995_v18  ;;  %v2294_v57 = vsel %vm2288_vm6, %v2291_v38, %v2293_v34 }
  0xe1   : > { %5914 = vsinq.f32 %v2447_v10  ;;  %vm5499_vm13 = vcmp.lt.s32.totalorder %v5498_v43, 0  ;;  %v7000_v21 = vmul.u32.u64.low %v6963_v52, %v2298_v16  ;;  %v7001_v48 = vmul.u32.u64.high %v6963_v52, %v2298_v16, %v7000_v21 }
  0xe2   : > { %vm2569_vm7 = vcmp.lt.s32.totalorder %v6615_v33, 0  ;;  %v2638_v2 = vsel %vm5499_vm13, 0, %v5498_v43  ;;  %v2463_v13 = vand.u32 2147483647, %v6903_v50  ;;  %vm2474_vm8 = vcmp.gt.s32.totalorder %v2473_v29, 0 }
  0xe3   : > { %5482 = vmatmul.mubr.msk.f32.gmra.mrb[4].mxu1 %vm775_vm1, %v6842_v51  ;;  %v2639_v62 = vsub.s32 32, %v2638_v2  ;;  %v2640_v58 = vshll.u32 %v6954_v46, %v2638_v2  ;;  %v2643_v8 = vsub.s32 4294967266, %v2638_v2  ;;  %v2475_v35 = vsel %vm2474_vm8, %v2473_v29, 0 }
  0xe4   : > { %2228 = vmatprep.mubr.f32.mxu1 %v5993_v24  ;;  %vm2451_vm9 = vweird.f32 %v6591_v0  ;;  %v2654_v9 = vsel %vm2569_vm7, %v2653_v41, %v6942_v42  ;;  %v2310_v51 = vmul.u32 %v6963_v52, %v2294_v57  ;;  %vm2312_vm10 = vc.u32 %v6996_v27, %v7000_v21 }
  0xe5   : > { %v2477_v22 = vand.u32 31, %v2475_v35  ;;  %vm2454_vm15 = vcmp.lt.s32.totalorder %v6960_v44, 2  ;;  %v2641_v20 = vshrl.u32 %v2623_v28, %v2639_v62  ;;  %v2644_v39 = vadd.s32 127, %v2643_v8 }
  0xe6   : > { %v2313_v30 = vadd.s32 1, %v7001_v48  ;;  %vm2455_vm5 = vcmp.eq.s32.totalorder %v6960_v44, 0  ;;  %vm2458_vm11 = vcmp.eq.s32.totalorder %v6960_v44, 2  ;;  %v2470_v42 = vand.u32 8388607, %v2463_v13 }
  0xe7   : > { %5483 = vmatmul.mubr.msk.f32.gmra.mrb[6].mxu1 %vm775_vm1, %v6890_v25  ;;  %v2478_v46 = vsub.s32 32, %v2477_v22  ;;  %v2642_v56 = vor.u32 %v2641_v20, %v2640_v58  ;;  %v2645_v61 = vshll.u32 %v2644_v39, 23  ;;  %v7027_v4 = vsel %vm6984_vm3, 0, %v2654_v9 }
  0xe8   : > { %v2314_v36 = vsel %vm2312_vm10, %v2313_v30, %v7001_v48  ;;  %2852 = vmatprep.mubr.f32.mxu1 %v5993_v24  ;;  %v7031_v25 = vshrl.u32 %v2475_v35, 5  ;;  %v2480_v26 = vshll.u32 %v5994_v1, %v2477_v22  ;;  %v2483_v17 = vshll.u32 %v5995_v3, %v2477_v22 }
  0xe9   : > { %v2315_v40 = vadd.s32 %v2314_v36, %v2310_v51  ;;  %v2646_v52 = vor.u32 4788187, %v2645_v61  ;;  %v2649_v47 = vcvt.s32.f32 %v2642_v56  ;;  %v2481_v31 = vshrl.u32 %v5995_v3, %v2478_v46 }
  0xea   : > { %v7035_v49 = vpop.eup %5912  ;;  %v2489_v55 = vshll.u32 %v5997_v11, %v2477_v22  ;;  %v2484_v53 = vshrl.u32 %v5996_v5, %v2478_v46  ;;  %v2490_v60 = vshrl.u32 %v5998_v14, %v2478_v46  ;;  %v2486_v32 = vshll.u32 %v5996_v5, %v2477_v22 }
  0xeb   : > { %v7039_v15 = vpop.eup %5914  ;;  %v2459_v45 = vxor.u32 2147483648, %v7035_v49  ;;  %v2316_v12 = vadd.s32 536870912, %v2315_v40  ;;  %v2647_v28 = vand.u32 2147483647, %v2646_v52  ;;  %v2487_v38 = vshrl.u32 %v5997_v11, %v2478_v46 }
  0xec   : > { %v2456_v63 = vxor.u32 2147483648, %v7039_v15  ;;  %v2492_v34 = vshll.u32 %v5998_v14, %v2477_v22  ;;  %v2493_v16 = vshrl.u32 %v5999_v19, %v2478_v46  ;;  %v2471_v11 = vor.u32 8388608, %v2470_v42 }
  0xed   : > { %v2460_v3 = vsel %vm2458_vm11, %v2459_v45, %v7039_v15  ;;  %v7052_v10 = vshrl.u32 %v2316_v12, 30  ;;  %v2650_v59 = vmul.f32 %v2649_v47, %v2647_v28  ;;  %v2482_v43 = vor.u32 %v2481_v31, %v2480_v26 }
  0xee   : > { %v2457_v5 = vsel %vm2455_vm5, %v7035_v49, %v2456_v63  ;;  %v2485_v18 = vor.u32 %v2484_v53, %v2483_v17  ;;  %v2491_v29 = vor.u32 %v2490_v60, %v2489_v55  ;;  %v2494_v57 = vor.u32 %v2493_v16, %v2492_v34 }
  0xef   : > { %v2461_v41 = vsel %vm2454_vm15, %v2457_v5, %v2460_v3  ;;  %v2318_v37 = vshll.u32 %v7052_v10, 30  ;;  %v2651_v19 = vxor.u32 2147483648, %v2650_v59  ;;  %vm2495_vm12 = vcmp.lt.s32.totalorder %v7031_v25, 1 }
  0xf0   : > { %v2462_v14 = vsel %vm2451_vm9, nan, %v2461_v41  ;;  %v2660_v48 = vadd.s32 3, %v7027_v4  ;;  %v2488_v62 = vor.u32 %v2487_v38, %v2486_v32  ;;  %vm2498_vm14 = vcmp.lt.s32.totalorder %v7031_v25, 4 }
  0xf1   : > { %5500 = vmatprep.subr.msk.mxu0 %vm788_vm0, %v2462_v14  ;;  %v2319_v2 = vsub.s32 %v2315_v40, %v2318_v37  ;;  %v2652_v44 = vsel %vm2569_vm7, %v2651_v19, %v2650_v59  ;;  %v2479_v58 = vshrl.u32 %v5994_v1, %v2478_v46  ;;  %vm2496_vm2 = vcmp.lt.s32.totalorder %v7031_v25, 2 }
  0xf2   : > { %vm2497_vm4 = vcmp.lt.s32.totalorder %v7031_v25, 3  ;;  %v2655_v8 = vsel %vm6984_vm3, %v6615_v33, %v2652_v44  ;;  %v2500_v9 = vsel %vm2498_vm14, %v2488_v62, 2102212464  ;;  %v2503_v51 = vsel %vm2495_vm12, %v2482_v43, %v2485_v18 }
  0xf3   : > { %v2321_v35 = vsub.s32 0, %v2319_v2  ;;  %5916 = vcosq.f32 %v2655_v8  ;;  %v2504_v22 = vsel %vm2498_vm14, %v2491_v29, 920167782  ;;  %v2508_v20 = vsel %vm2498_vm14, %v2494_v57, 1326507024 }
  0xf4   : > { %v2511_v39 = vshll.u32 %v2471_v11, 8  ;;  %5918 = vsinq.f32 %v2655_v8  ;;  %v2505_v1 = vsel %vm2497_vm4, %v2488_v62, %v2504_v22  ;;  %v2507_v42 = vsel %vm2495_vm12, %v2485_v18, %v2488_v62 }
  0xf5   : > { %v5485_v30 = vmin.u32 %v2321_v35, %v2319_v2  ;;  %v2499_v23 = vsel %vm2495_vm12, %v2479_v58, %v2482_v43  ;;  %v2501_v46 = vsel %vm2497_vm4, %v2485_v18, %v2500_v9  ;;  %v2506_v56 = vsel %vm2496_vm2, %v2503_v51, %v2505_v1  ;;  %v753_v58 = vld [vmem:[%s7659_s8 + $0x10] sm:$0xff] }
  0xf6   : > { %v2509_v61 = vsel %vm2497_vm4, %v2491_v29, %v2508_v20  ;;  %v7094_v26 = vmul.u32.u64.low %v2511_v39, %v2506_v56  ;;  %v7095_v17 = vmul.u32.u64.high %v2511_v39, %v2506_v56, %v7094_v26  ;;  %v2502_v47 = vsel %vm2496_vm2, %v2499_v23, %v2501_v46  ;;  %v752_v20 = vld [vmem:[%s7659_s8 + $0x8] sm:$0xff]  ;;  %v3968_v56 = vld [vmem:[%s7660_s10] sm:$0xff] }
  0xf7   : > { %v2323_v36 = vclz %v5485_v30  ;;  %v2510_v40 = vsel %vm2496_vm2, %v2507_v42, %v2509_v61  ;;  %v2661_v12 = vand.u32 3, %v2660_v48  ;;  %v2311_v53 = vadd.s32 %v7000_v21, %v6996_v27  ;;  %v754_v30 = vld [vmem:[%s7659_s8 + $0x18] sm:$0xff] }
  0xf8   : > { %v7100_v31 = vmul.u32.u64.low %v2511_v39, %v2510_v40  ;;  %v7101_v55 = vmul.u32.u64.high %v2511_v39, %v2510_v40, %v7100_v31  ;;  %v2518_v28 = vmul.u32 %v2511_v39, %v2502_v47  ;;  %v2521_v32 = vadd.s32 1, %v7095_v17  ;;  %v3970_v47 = vld [vmem:[%s7660_s10 + $0x10] sm:$0xff] }
  0xf9   : > { %v5486_v52 = vadd.s32 4294967294, %v2323_v36  ;;  %vm2663_vm3 = vcmp.eq.s32.totalorder %v2661_v12, 0  ;;  %vm2666_vm13 = vcmp.eq.s32.totalorder %v2661_v12, 2  ;;  %vm2662_vm8 = vcmp.lt.s32.totalorder %v2661_v12, 2 }
  0xfa   : > { %vm2520_vm7 = vc.u32 %v7101_v55, %v7094_v26  ;;  %vm2659_vm10 = vweird.f32 %v6615_v33  ;;  %v2341_v35 = vsub.s32 4, %v7052_v10  ;;  %v6000_v9 = vmov 0   ;;  %v3308_v33 = vld [vmem:[%s7662_s4 + $0x18] sm:$0xff] }
  0xfb   : > { %vm5487_vm6 = vcmp.lt.s32.totalorder %v5486_v52, 0  ;;  %v2522_v59 = vsel %vm2520_vm7, %v2521_v32, %v7095_v17  ;;  %5894 = vset.pattern.permute.xlu0 %v6000_v9  ;;  %5895 = vset.pattern.permute.xlu1 %v6000_v9  ;;  %vm2257_vm15 = vcmp.lt.s32.totalorder %v6750_v6, 0  ;;  %vm2256_vm5 = vcmp.le.f32.partialorder %v2255_v7, 0.7853982  ;;  %v3969_v7 = vld [vmem:[%s7660_s10 + $0x8] sm:$0xff] }
  0xfc   : > { %v2326_v60 = vsel %vm5487_vm6, 0, %v5486_v52  ;;  %v2523_v43 = vadd.s32 %v2522_v59, %v2518_v28  ;;  %767 = vperm.xlu1 %5895, %v753_v58   ;;  %v2342_v42 = vsel %vm2257_vm15, %v2341_v35, %v7052_v10  ;;  %v3089_v17 = vand.u32 3, %v6929_v54  ;;  %v4550_v54 = vld [vmem:[%s7608_s13] sm:$0xff] }
  0xfd   : > { %v2327_v38 = vsub.s32 32, %v2326_v60  ;;  %v2328_v3 = vshll.u32 %v2319_v2, %v2326_v60  ;;  %v2331_v34 = vsub.s32 4294967266, %v2326_v60  ;;  %v7106_v16 = vpop.eup %5916  ;;  %v751_v2 = vld [vmem:[%s7659_s8] sm:$0xff]  ;;  %v2344_v36 = vsel %vm2256_vm5, 0, %v2342_v42  ;;  %s7661_s8 = sld [smem:[#allocation11_spill]]  ;;  %v4611_v42 = vld [vmem:[%s7610_s15 + $0x10] sm:$0xff] }
  0xfe   : > { %v7110_v25 = vpop.eup %5918  ;;  %v2667_v5 = vxor.u32 2147483648, %v7106_v16  ;;  %v2524_v14 = vadd.s32 536870912, %v2523_v43  ;;  %757 = vperm.xlu0 %5894, %v751_v2   ;;  %v2348_v52 = vadd.s32 3, %v2344_v36  ;;  %vm3091_vm11 = vcmp.eq.s32.totalorder %v3089_v17, 0 }
  0xff   : > { %v2329_v27 = vshrl.u32 %v2311_v53, %v2327_v38  ;;  %v2332_v21 = vadd.s32 127, %v2331_v34  ;;  %v2664_v11 = vxor.u32 2147483648, %v7110_v25  ;;  %vm3094_vm12 = vcmp.eq.s32.totalorder %v3089_v17, 2  ;;  %v4551_v38 = vld [vmem:[%s7608_s13 + $0x8] sm:$0xff] }
 0x100   : > { %v2668_v41 = vsel %vm2666_vm13, %v2667_v5, %v7110_v25  ;;  %v7127_v44 = vshrl.u32 %v2524_v14, 30  ;;  %772 = vperm.xlu1 %5895, %v754_v30   ;;  %v2519_v12 = vadd.s32 %v7094_v26, %v7101_v55  ;;  %vm3090_vm2 = vcmp.lt.s32.totalorder %v3089_v17, 2  ;;  %v4552_v55 = vld [vmem:[%s7608_s13 + $0x10] sm:$0xff] }
 0x101   : > { %v2330_v37 = vor.u32 %v2329_v27, %v2328_v3  ;;  %v2333_v18 = vshll.u32 %v2332_v21, 23  ;;  %v2665_v29 = vsel %vm2663_vm3, %v7106_v16, %v2664_v11  ;;  %v2349_v53 = vand.u32 3, %v2348_v52 }
 0x102   : > { %v2669_v19 = vsel %vm2662_vm8, %v2665_v29, %v2668_v41  ;;  %v2526_v51 = vshll.u32 %v7127_v44, 30  ;;  %762 = vperm.xlu0 %5894, %v752_v20   ;;  %v3093_v28 = vsel %vm3091_vm11, %v7035_v49, %v2456_v63  ;;  %v2986_v32 = vand.u32 3, %v2344_v36  ;;  %v4553_v41 = vld [vmem:[%s7608_s13 + $0x18] sm:$0xff] }
 0x103   : > { %v2334_v57 = vor.u32 4788187, %v2333_v18  ;;  %v2337_v48 = vcvt.s32.f32 %v2330_v37  ;;  %v2670_v62 = vsel %vm2659_vm10, nan, %v2669_v19  ;;  %v3096_v26 = vsel %vm3094_vm12, %v2459_v45, %v7039_v15  ;;  %v4609_v18 = vld [vmem:[%s7610_s15] sm:$0xff]  ;;  %v7233_v17 = vld [vmem:[%s7661_s8 + $0x10] sm:$0xff]  ;;  %v7242_v52 = vld [vmem:[%s7661_s8 + $0x18] sm:$0xff] }
 0x104   : > { %5506 = vmatprep.subr.msk.mxu1 %vm788_vm0, %v2670_v62  ;;  %v2527_v39 = vsub.s32 %v2523_v43, %v2526_v51  ;;  %3978 = vperm.xlu1 %5895, %v3969_v7   ;;  %vm2351_vm4 = vcmp.eq.s32.totalorder %v2349_v53, 0  ;;  %vm2354_vm6 = vcmp.eq.s32.totalorder %v2349_v53, 2  ;;  %v3097_v43 = vsel %vm3090_vm2, %v3093_v28, %v3096_v26  ;;  %v727_v28 = vld [vmem:[%s6229_s0 + $0x20] sm:$0xff] }
 0x105   : > { %v2335_v8 = vand.u32 2147483647, %v2334_v57  ;;  %vm2991_vm3 = vcmp.eq.s32.totalorder %v2986_v32, 2  ;;  %vm2988_vm13 = vcmp.eq.s32.totalorder %v2986_v32, 0  ;;  %vm2347_vm7 = vweird.f32 %v6750_v6 }
 0x106   : > { %v2529_v23 = vsub.s32 0, %v2527_v39  ;;  %3973 = vperm.xlu0 %5894, %v3968_v56   ;;  %vm2350_vm8 = vcmp.lt.s32.totalorder %v2349_v53, 2  ;;  %v3098_v62 = vsel %vm2451_vm9, nan, %v3097_v43  ;;  %v2549_v51 = vsub.s32 4, %v7127_v44  ;;  %v7217_v56 = vld [vmem:[%s7661_s8 + $0x8] sm:$0xff] }
 0x107   : > { %v2338_v22 = vmul.f32 %v2337_v48, %v2335_v8  ;;  %v4610_v8 = vld [vmem:[%s7610_s15 + $0x8] sm:$0xff]  ;;  %vm2465_vm9 = vcmp.lt.s32.totalorder %v6903_v50, 0 }
 0x108   : > { %v5493_v40 = vmin.u32 %v2529_v23, %v2527_v39  ;;  %4556 = vperm.xlu1 %5895, %v4550_v54   ;;  %v732_v54 = vld [vmem:[%s6229_s0 + $0x48] sm:$0xff] }
 0x109   : > { %v2339_v1 = vxor.u32 2147483648, %v2338_v22 }
 0x10a   : > { %v2531_v10 = vclz %v5493_v40  ;;  %3983 = vperm.xlu0 %5894, %v3970_v47   ;;  %v5167_v40 = vld [vmem:[%s7615_s20] sm:$0x7] }
 0x10b   : > { %v2340_v46 = vsel %vm2257_vm15, %v2339_v1, %v2338_v22  ;;  %vm2987_vm15 = vcmp.lt.s32.totalorder %v2986_v32, 2  ;;  %v7192_v22 = vld [vmem:[%s7661_s8] sm:$0xff]  ;;  %v728_v1 = vld [vmem:[%s6229_s0 + $0x28] sm:$0xff]  ;;  %s5933_s8 = sshll.u32 %s6001_s1, 4  ;;  %s5934_s8 = int_to_ptr.vmem [resolvable:$false] %s5933_s8 }
 0x10c   : > { %v2343_v61 = vsel %vm2256_vm5, %v6750_v6, %v2340_v46  ;;  %v5494_v31 = vadd.s32 4294967294, %v2531_v10  ;;  %4566 = vperm.xlu1 %5895, %v4552_v55   ;;  %v5138_v6 = vld [vmem:[%s7613_s18] sm:$0xff]  ;;  %vm2464_vm5 = vcmp.le.f32.partialorder %v2463_v13, 0.7853982  ;;  %v2550_v46 = vsel %vm2465_vm9, %v2549_v51, %v7127_v44  ;;  %v5139_v13 = vld [vmem:[%s7613_s18 + $0x8] sm:$0xff]  ;;  %v737_v51 = vld [vmem:[%s6229_s0 + $0x70] sm:$0xff] }
 0x10d   : > { %5920 = vcosq.f32 %v2343_v61  ;;  %v2552_v44 = vsel %vm2464_vm5, 0, %v2550_v46  ;;  %v3295_v10 = vand.u32 3, %v7027_v4  ;;  %v7252_v4 = vld [vmem:[%s7662_s4] sm:$0xff] }
 0x10e   : > { %5922 = vsinq.f32 %v2343_v61  ;;  %vm5495_vm14 = vcmp.lt.s32.totalorder %v5494_v31, 0  ;;  %4561 = vperm.xlu0 %5894, %v4551_v38   ;;  %v2556_v7 = vadd.s32 3, %v2552_v44 }
 0x10f   : > { %v2534_v60 = vsel %vm5495_vm14, 0, %v5494_v31  ;;  %vm3297_vm11 = vcmp.eq.s32.totalorder %v3295_v10, 0  ;;  %vm3300_vm12 = vcmp.eq.s32.totalorder %v3295_v10, 2  ;;  %v3192_v31 = vand.u32 3, %v2552_v44 }
 0x110   : > { %v2535_v3 = vsub.s32 32, %v2534_v60  ;;  %v2536_v34 = vshll.u32 %v2527_v39, %v2534_v60  ;;  %v2539_v27 = vsub.s32 4294967266, %v2534_v60  ;;  %4614 = vperm.xlu1 %5895, %v4609_v18   ;;  %v2557_v47 = vand.u32 3, %v2556_v7 }
 0x111   : > { %vm3296_vm14 = vcmp.lt.s32.totalorder %v3295_v10, 2  ;;  %v3299_v53 = vsel %vm3297_vm11, %v7106_v16, %v2664_v11  ;;  %v3302_v60 = vsel %vm3300_vm12, %v2667_v5, %v7110_v25  ;;  %v3306_v16 = vld [vmem:[%s7662_s4 + $0x8] sm:$0xff] }
 0x112   : > { %v2537_v21 = vshrl.u32 %v2519_v12, %v2535_v3  ;;  %v2540_v59 = vadd.s32 127, %v2539_v27  ;;  %4571 = vperm.xlu0 %5894, %v4553_v41   ;;  %v736_v12 = vld [vmem:[%s6229_s0 + $0x68] sm:$0xff]  ;;  %vm2562_vm2 = vcmp.eq.s32.totalorder %v2557_v47, 2  ;;  %v3303_v11 = vsel %vm3296_vm14, %v3299_v53, %v3302_v60 }
 0x113   : > { %v7261_v32 = vpack.c.bf16 %v736_v12, %v732_v54 }
 0x114   : > { %v2538_v45 = vor.u32 %v2537_v21, %v2536_v34  ;;  %v2541_v37 = vshll.u32 %v2540_v59, 23  ;;  %4624 = vperm.xlu1 %5895, %v4611_v42   ;;  %v3304_v59 = vsel %vm2659_vm10, nan, %v3303_v11  ;;  %vm3531_vm10 = vcmask 64512  }
 0x116   : > { %v2542_v19 = vor.u32 4788187, %v2541_v37  ;;  %v2545_v57 = vcvt.s32.f32 %v2538_v45  ;;  %4619 = vperm.xlu0 %5894, %v4610_v8   ;;  %v735_v45 = vld [vmem:[%s6229_s0 + $0x60] sm:$0xff]  ;;  %v3530_v8 = vld [vmem:[%s7663_s6 + $0x18] sm:$0xff] }
 0x117   : > { %v5921_v63 = vpop.eup %5920  ;;  %v3527_v37 = vld [vmem:[%s7663_s6] sm:$0xff] }
 0x118   : > { %v5923_v49 = vpop.eup %5922  ;;  %v2355_v15 = vxor.u32 2147483648, %v5921_v63  ;;  %v2543_v9 = vand.u32 2147483647, %v2542_v19  ;;  %5147 = vperm.xlu1 %5895, %v5139_v13   ;;  %v734_v19 = vld [vmem:[%s6229_s0 + $0x58] sm:$0xff] }
 0x119   : > { %v2352_v29 = vxor.u32 2147483648, %v5923_v49 }
 0x11a   : > { %v2356_v14 = vsel %vm2354_vm6, %v2355_v15, %v5923_v49  ;;  %v2993_v48 = vsel %vm2991_vm3, %v2355_v15, %v5923_v49  ;;  %v2546_v30 = vmul.f32 %v2545_v57, %v2543_v9  ;;  %5142 = vperm.xlu0 %5894, %v5138_v6   ;;  %vm2559_vm6 = vcmp.eq.s32.totalorder %v2557_v47, 0  ;;  %v730_v49 = vld [vmem:[%s6229_s0 + $0x38] sm:$0xff]  ;;  %v731_v15 = vld [vmem:[%s6229_s0 + $0x40] sm:$0xff]  ;;  %v733_v9 = vld [vmem:[%s6229_s0 + $0x50] sm:$0xff] }
 0x11b   : > { %v2353_v2 = vsel %vm2351_vm4, %v5921_v63, %v2352_v29  ;;  %v2990_v58 = vsel %vm2988_vm13, %v5921_v63, %v2352_v29  ;;  %vm3197_vm4 = vcmp.eq.s32.totalorder %v3192_v31, 2  ;;  %vm3194_vm3 = vcmp.eq.s32.totalorder %v3192_v31, 0  ;;  %v7306_v29 = vld [vmem:[%s6229_s0 + $0x88] sm:$0xff]  ;;  %v738_v57 = vld [vmem:[%s6229_s0 + $0x78] sm:$0xff] }
 0x11c   : > { %v2357_v35 = vsel %vm2350_vm8, %v2353_v2, %v2356_v14  ;;  %v2994_v20 = vsel %vm2987_vm15, %v2990_v58, %v2993_v48  ;;  %v2547_v23 = vxor.u32 2147483648, %v2546_v30  ;;  %vm2558_vm13 = vcmp.lt.s32.totalorder %v2557_v47, 2  ;;  %v3528_v14 = vld [vmem:[%s7663_s6 + $0x8] sm:$0xff]  ;;  %v7320_v48 = vld [vmem:[%s6229_s0 + $0x80] sm:$0xff]  ;;  %v729_v2 = vld [vmem:[%s6229_s0 + $0x30] sm:$0xff] }
 0x11d   : > { %v2358_v0 = vsel %vm2347_vm7, nan, %v2357_v35  ;;  %v2995_v39 = vsel %vm2347_vm7, nan, %v2994_v20  ;;  %vm3193_vm7 = vcmp.lt.s32.totalorder %v3192_v31, 2  ;;  %vm2555_vm8 = vweird.f32 %v6903_v50  ;;  %v3529_v58 = vld [vmem:[%s7663_s6 + $0x10] sm:$0xff]  ;;  %v3738_v35 = vld [vmem:[%s7664_s7] sm:$0xff]  ;;  %s7551_s6 = scalar_lea.hbm %s7616_s21, %s5604_s23 }
 0x11e   : > { %5501 = vmatpush1.msk.msra.mxu0 %vm788_vm0, %v2358_v0  ;;  %v2548_v61 = vsel %vm2465_vm9, %v2547_v23, %v2546_v30  ;;  %5170 = vperm.xlu0 %5894, %v5167_v40   ;;  %v7300_v18 = vpack.c.bf16 %v735_v45, %v731_v15  ;;  %vm3742_vm15 = vcmask 195584   ;;  %v7359_v20 = vpack.c.bf16 %v737_v51, %v733_v9  ;;  %v7363_v0 = vld [vmem:[%s6229_s0 + $0x98] sm:$0xff]  ;;  %v7374_v30 = vld [vmem:[%s6229_s0 + $0x90] sm:$0xff] }
 0x11f   : > { %5502 = vmatmul.mubr.msk.f32.vlgmr.msra.gmra.mrb[0].mxu0 %vm775_vm1, %v7192_v22  ;;  %5528 = vmatprep.subr.msk.mxu0 %vm788_vm0, %v3098_v62  ;;  %v2551_v36 = vsel %vm2464_vm5, %v6903_v50, %v2548_v61  ;;  %v3307_v50 = vld [vmem:[%s7662_s4 + $0x10] sm:$0xff]  ;;  %v7325_v62 = vpack.c.bf16 %v738_v57, %v734_v19  ;;  %vm3986_vm9 = vcmask 261120  }
 0x120   : > { %2769 = vmatprep.mubr.f32.mxu0 %v5993_v24  ;;  %5529 = vmatpush1.msk.msra.mxu0 %vm788_vm0, %v2995_v39  ;;  %5924 = vcosq.f32 %v2551_v36  ;;  %v3740_v39 = vld [vmem:[%s7664_s7 + $0x10] sm:$0xff] }
 0x121   : > { %3544 = vmatprep.subr.mxu0 %v728_v1  ;;  %5926 = vsinq.f32 %v2551_v36  ;;  %v3741_v1 = vld [vmem:[%s7664_s7 + $0x18] sm:$0xff] }
 0x123   : > { %5503 = vmatmul.mubr.msk.f32.gmra.mrb[2].mxu0 %vm775_vm1, %v7217_v56 }
 0x124   : > { %2775 = vmatprep.mubr.f32.mxu0 %v5993_v24 }
 0x127   : > { %5504 = vmatmul.mubr.msk.f32.gmra.mrb[4].mxu0 %vm775_vm1, %v7233_v17 }
 0x128   : > { %2781 = vmatprep.mubr.f32.mxu0 %v5993_v24 }
 0x12a   : > { %v5925_v38 = vpop.eup %5924 }
 0x12b   : > { %5505 = vmatmul.mubr.msk.f32.gmra.mrb[6].mxu0 %vm775_vm1, %v7242_v52  ;;  %v5927_v3 = vpop.eup %5926  ;;  %v2563_v34 = vxor.u32 2147483648, %v5925_v38 }
 0x12c   : > { %3397 = vmatprep.mubr.f32.mxu0 %v5993_v24  ;;  %v2560_v27 = vxor.u32 2147483648, %v5927_v3 }
 0x12d   : > { %v2564_v25 = vsel %vm2562_vm2, %v2563_v34, %v5927_v3  ;;  %v3199_v5 = vsel %vm3197_vm4, %v2563_v34, %v5927_v3 }
 0x12e   : > { %v2561_v26 = vsel %vm2559_vm6, %v5925_v38, %v2560_v27  ;;  %v3196_v55 = vsel %vm3194_vm3, %v5925_v38, %v2560_v27 }
 0x12f   : > { %5530 = vmatmul.mubr.msk.f32.vlgmr.msra.gmra.mrb[0].mxu0 %vm775_vm1, %v7252_v4  ;;  %v2565_v21 = vsel %vm2558_vm13, %v2561_v26, %v2564_v25  ;;  %v3200_v63 = vsel %vm3193_vm7, %v3196_v55, %v3199_v5 }
 0x130   : > { %3403 = vmatprep.mubr.f32.mxu0 %v5993_v24  ;;  %3545 = vmatpush1.msra.mxu0 %v727_v28  ;;  %v2566_v43 = vsel %vm2555_vm8, nan, %v2565_v21  ;;  %v3201_v41 = vsel %vm2555_vm8, nan, %v3200_v63  ;;  %v3965_v21 = vld [vmem:[%s7665_s9] sm:$0xff] }
 0x131   : > { %5606 = vmatprep.subr.bf16.mxu0 %v7261_v32  ;;  %5507 = vmatpush1.msk.msra.mxu1 %vm788_vm0, %v2566_v43 }
 0x132   : > { %5508 = vmatmul.mubr.msk.f32.vlgmr.msra.gmra.mrb[0].mxu1 %vm775_vm1, %v7192_v22  ;;  %5534 = vmatprep.subr.msk.mxu1 %vm788_vm0, %v3304_v59  ;;  %v3739_v22 = vld [vmem:[%s7664_s7 + $0x8] sm:$0xff] }
 0x133   : > { %5531 = vmatmul.mubr.msk.f32.gmra.mrb[2].mxu0 %vm775_vm1, %v3306_v16  ;;  %2858 = vmatprep.mubr.f32.mxu1 %v5993_v24 }
 0x134   : > { %3409 = vmatprep.mubr.f32.mxu0 %v5993_v24  ;;  %5535 = vmatpush1.msk.msra.mxu1 %vm788_vm0, %v3201_v41  ;;  %v3966_v41 = vld [vmem:[%s7665_s9 + $0x8] sm:$0xff] }
 0x135   : > { %3633 = vmatprep.subr.mxu1 %v730_v49 }
 0x136   : > { %5509 = vmatmul.mubr.msk.f32.gmra.mrb[2].mxu1 %vm775_vm1, %v7217_v56 }
 0x137   : > { %5532 = vmatmul.mubr.msk.f32.gmra.mrb[4].mxu0 %vm775_vm1, %v3307_v50  ;;  %2864 = vmatprep.mubr.f32.mxu1 %v5993_v24 }
 0x138   : > { %3415 = vmatprep.mubr.f32.mxu0 %v5993_v24 }
 0x13a   : > { %5510 = vmatmul.mubr.msk.f32.gmra.mrb[4].mxu1 %vm775_vm1, %v7233_v17 }
 0x13b   : > { %5533 = vmatmul.mubr.msk.f32.gmra.mrb[6].mxu0 %vm775_vm1, %v3308_v33  ;;  %2870 = vmatprep.mubr.f32.mxu1 %v5993_v24 }
 0x13c   : > { %3608 = vmatprep.mubr.f32.mxu0 %v5993_v24 }
 0x13e   : > { %5511 = vmatmul.mubr.msk.f32.gmra.mrb[6].mxu1 %vm775_vm1, %v7242_v52 }
 0x13f   : > { %5540 = vmatmul.mubr.msk.f32.vlgmr.msra.gmra.mrb[0].mxu0 %vm3531_vm10, %v3527_v37  ;;  %3486 = vmatprep.mubr.f32.mxu1 %v5993_v24 }
 0x140   : > { %3614 = vmatprep.mubr.f32.mxu0 %v5993_v24  ;;  %5608 = vmatpush1.bf16.msra.mxu0 %v7300_v18 }
 0x141   : > { %3759 = vmatprep.subr.mxu0 %v7306_v29 }
 0x142   : > { %5536 = vmatmul.mubr.msk.f32.vlgmr.msra.gmra.mrb[0].mxu1 %vm775_vm1, %v7252_v4 }
 0x143   : > { %5541 = vmatmul.mubr.msk.f32.gmra.mrb[2].mxu0 %vm3531_vm10, %v3528_v14  ;;  %3492 = vmatprep.mubr.f32.mxu1 %v5993_v24 }
 0x144   : > { %3620 = vmatprep.mubr.f32.mxu0 %v5993_v24  ;;  %3760 = vmatpush1.msra.mxu0 %v7320_v48 }
 0x145   : > { %3634 = vmatpush1.msra.mxu1 %v729_v2 }
 0x146   : > { %5610 = vmatprep.subr.bf16.mxu1 %v7325_v62  ;;  %5537 = vmatmul.mubr.msk.f32.gmra.mrb[2].mxu1 %vm775_vm1, %v3306_v16 }
 0x147   : > { %5542 = vmatmul.mubr.msk.f32.gmra.mrb[4].mxu0 %vm3531_vm10, %v3529_v58  ;;  %3498 = vmatprep.mubr.f32.mxu1 %v5993_v24 }
 0x148   : > { %3626 = vmatprep.mubr.f32.mxu0 %v5993_v24 }
 0x14a   : > { %5538 = vmatmul.mubr.msk.f32.gmra.mrb[4].mxu1 %vm775_vm1, %v3307_v50 }
 0x14b   : > { %5543 = vmatmul.mubr.msk.f32.gmra.mrb[6].mxu0 %vm3531_vm10, %v3530_v8  ;;  %3504 = vmatprep.mubr.f32.mxu1 %v5993_v24 }
 0x14c   : > { %3819 = vmatprep.mubr.f32.mxu0 %v5993_v24 }
 0x14e   : > { %5539 = vmatmul.mubr.msk.f32.gmra.mrb[6].mxu1 %vm775_vm1, %v3308_v33 }
 0x14f   : > { %5548 = vmatmul.mubr.msk.f32.vlgmr.msra.gmra.mrb[0].mxu0 %vm3742_vm15, %v3738_v35  ;;  %3697 = vmatprep.mubr.f32.mxu1 %v5993_v24 }
 0x150   : > { %3825 = vmatprep.mubr.f32.mxu0 %v5993_v24 }
 0x152   : > { %5544 = vmatmul.mubr.msk.f32.vlgmr.msra.gmra.mrb[0].mxu1 %vm3531_vm10, %v3527_v37 }
 0x153   : > { %5549 = vmatmul.mubr.msk.f32.gmra.mrb[2].mxu0 %vm3742_vm15, %v3739_v22  ;;  %3703 = vmatprep.mubr.f32.mxu1 %v5993_v24 }
 0x154   : > { %3831 = vmatprep.mubr.f32.mxu0 %v5993_v24  ;;  %5612 = vmatpush1.bf16.msra.mxu1 %v7359_v20 }
 0x155   : > { %3848 = vmatprep.subr.mxu1 %v7363_v0 }
 0x156   : > { %5545 = vmatmul.mubr.msk.f32.gmra.mrb[2].mxu1 %vm3531_vm10, %v3528_v14  ;;  %v3967_v14 = vld [vmem:[%s7665_s9 + $0x10] sm:$0xff]  ;;  %s5935_s9 = scalar_lea.vmem %s5934_s8, 512 }
 0x157   : > { %5550 = vmatmul.mubr.msk.f32.gmra.mrb[4].mxu0 %vm3742_vm15, %v3740_v39  ;;  %3709 = vmatprep.mubr.f32.mxu1 %v5993_v24 }
 0x158   : > { %3837 = vmatprep.mubr.f32.mxu0 %v5993_v24  ;;  %3849 = vmatpush1.msra.mxu1 %v7374_v30 }
 0x15a   : > { %5546 = vmatmul.mubr.msk.f32.gmra.mrb[4].mxu1 %vm3531_vm10, %v3529_v58 }
 0x15b   : > { %5551 = vmatmul.mubr.msk.f32.gmra.mrb[6].mxu0 %vm3742_vm15, %v3741_v1  ;;  %3715 = vmatprep.mubr.f32.mxu1 %v5993_v24 }
 0x15c   : > { %4060 = vmatprep.mubr.f32.mxu0 %v5993_v24 }
 0x15e   : > { %5547 = vmatmul.mubr.msk.f32.gmra.mrb[6].mxu1 %vm3531_vm10, %v3530_v8 }
 0x15f   : > { %3908 = vmatprep.mubr.f32.mxu1 %v5993_v24 }
 0x162   : > { %5552 = vmatmul.mubr.msk.f32.vlgmr.msra.gmra.mrb[0].mxu1 %vm3742_vm15, %v3738_v35 }
 0x163   : > { %3914 = vmatprep.mubr.f32.mxu1 %v5993_v24 }
 0x166   : > { %5553 = vmatmul.mubr.msk.f32.gmra.mrb[2].mxu1 %vm3742_vm15, %v3739_v22 }
 0x167   : > { %3920 = vmatprep.mubr.f32.mxu1 %v5993_v24 }
 0x16a   : > { %5554 = vmatmul.mubr.msk.f32.gmra.mrb[4].mxu1 %vm3742_vm15, %v3740_v39 }
 0x16b   : > { %3926 = vmatprep.mubr.f32.mxu1 %v5993_v24 }
 0x16e   : > { %5555 = vmatmul.mubr.msk.f32.gmra.mrb[6].mxu1 %vm3742_vm15, %v3741_v1 }
 0x16f   : > { %4143 = vmatprep.mubr.f32.mxu1 %v5993_v24 }
 0x17b   : > { %v768_v40 = vpop.permute.xlu1 %767 }
 0x17d   : > { %v758_v42 = vpop.permute.xlu0 %757 }
 0x17f   : > { %v773_v60 = vpop.permute.xlu1 %772 }
 0x181   : > { %v763_v56 = vpop.permute.xlu0 %762 }
 0x222   : > { %v3821_v6 = vpop.f32.mrb[0].mxu0 }
 0x223   : > { %v3823_v23 = vpop.f32.mrb[1].mxu0  ;;  %v5677_v46 = vadd.f32 %v3821_v6, %v758_v42 }
 0x224   : > { %v5678_v61 = vadd.f32 %v3823_v23, %v758_v42 }
 0x225   : > { %v3949_v7 = vmax.f32 %v5677_v46, 0.0 }
 0x226   : > { %v3827_v13 = vpop.f32.mrb[2].mxu0  ;;  %v3950_v52 = vmax.f32 %v5678_v61, 0.0 }
 0x227   : > { %v5679_v36 = vadd.f32 %v3827_v13, %v763_v56  ;;  %v3829_v44 = vpop.f32.mrb[3].mxu0  ;;  %v3974_v13 = vpop.permute.xlu0 %3973 }
 0x228   : > { %v5680_v17 = vadd.f32 %v3829_v44, %v763_v56 }
 0x229   : > { %v3953_v10 = vmax.f32 %v5679_v36, 0.0  ;;  %v3979_v36 = vpop.permute.xlu1 %3978 }
 0x22a   : > { %v3954_v47 = vmax.f32 %v5680_v17, 0.0  ;;  %v3833_v31 = vpop.f32.mrb[4].mxu0 }
 0x22b   : > { %v5615_v54 = vpack.c.bf16 %v3953_v10, %v3949_v7  ;;  %v3835_v12 = vpop.f32.mrb[5].mxu0  ;;  %v5681_v53 = vadd.f32 %v3833_v31, %v768_v40 }
 0x22c   : > { %v5613_v4 = vpack.c.bf16 %v3954_v47, %v3950_v52  ;;  %v5682_v28 = vadd.f32 %v3835_v12, %v768_v40  ;;  %v3984_v12 = vpop.permute.xlu0 %3983 }
 0x22d   : > { %v3957_v11 = vmax.f32 %v5681_v53, 0.0 }
 0x22e   : > { %v3839_v38 = vpop.f32.mrb[6].mxu0  ;;  %5614 = vmatprep.subr.bf16.mxu0 %v5613_v4  ;;  %v3958_v25 = vmax.f32 %v5682_v28, 0.0  ;;  %v4162_v28 = vld [vmem:[%s7606_s11] sm:$0xff] }
 0x22f   : > { %v5683_v3 = vadd.f32 %v3839_v38, %v773_v60  ;;  %v3841_v34 = vpop.f32.mrb[7].mxu0  ;;  %5616 = vmatpush1.bf16.msra.mxu0 %v5615_v54  ;;  %v4163_v38 = vld [vmem:[%s7606_s11 + $0x8] sm:$0xff] }
 0x230   : > { %v5684_v27 = vadd.f32 %v3841_v34, %v773_v60 }
 0x231   : > { %v3961_v16 = vmax.f32 %v5683_v3, 0.0  ;;  %v4164_v3 = vld [vmem:[%s7606_s11 + $0x10] sm:$0xff] }
 0x232   : > { %v3962_v5 = vmax.f32 %v5684_v27, 0.0 }
 0x233   : > { %v5619_v26 = vpack.c.bf16 %v3961_v16, %v3957_v11  ;;  %v4165_v11 = vld [vmem:[%s7606_s11 + $0x18] sm:$0xff] }
 0x234   : > { %v5617_v55 = vpack.c.bf16 %v3962_v5, %v3958_v25 }
 0x235   : > { %v3910_v59 = vpop.f32.mrb[0].mxu1 }
 0x236   : > { %5618 = vmatprep.subr.bf16.mxu0 %v5617_v55  ;;  %v3912_v63 = vpop.f32.mrb[1].mxu1  ;;  %v5685_v43 = vadd.f32 %v3910_v59, %v758_v42 }
 0x237   : > { %5620 = vmatpush1.bf16.msra.mxu0 %v5619_v26  ;;  %v5686_v50 = vadd.f32 %v3912_v63, %v758_v42 }
 0x238   : > { %5630 = vmatprep.subr.bf16.mxu0 %v7261_v32  ;;  %v3951_v32 = vmax.f32 %v5685_v43, 0.0 }
 0x239   : > { %v3916_v49 = vpop.f32.mrb[2].mxu1 }
 0x23a   : > { %5556 = vmatmul.mubr.msk.f32.vlgmr.msra.gmra.mrb[8].mxu0 %vm3986_vm9, %v3965_v21  ;;  %v5687_v33 = vadd.f32 %v3916_v49, %v763_v56  ;;  %v3918_v15 = vpop.f32.mrb[3].mxu1 }
 0x23b   : > { %4066 = vmatprep.mubr.f32.mxu0 %v5993_v24  ;;  %5632 = vmatpush1.bf16.msra.mxu0 %v7300_v18  ;;  %v5688_v45 = vadd.f32 %v3918_v15, %v763_v56  ;;  %v3952_v18 = vmax.f32 %v5686_v50, 0.0 }
 0x23c   : > { %4186 = vmatprep.subr.mxu0 %v7306_v29  ;;  %v3955_v37 = vmax.f32 %v5687_v33, 0.0 }
 0x23d   : > { %v3956_v19 = vmax.f32 %v5688_v45, 0.0  ;;  %v3922_v57 = vpop.f32.mrb[4].mxu1  ;;  %v4557_v45 = vpop.permute.xlu1 %4556 }
 0x23e   : > { %5557 = vmatmul.mubr.msk.f32.gmra.mrb[10].mxu0 %vm3986_vm9, %v3966_v41  ;;  %v5623_v2 = vpack.c.bf16 %v3955_v37, %v3951_v32  ;;  %v3924_v29 = vpop.f32.mrb[5].mxu1  ;;  %v5689_v8 = vadd.f32 %v3922_v57, %v768_v40  ;;  %v4562_v37 = vpop.permute.xlu0 %4561 }
 0x23f   : > { %4072 = vmatprep.mubr.f32.mxu0 %v5993_v24  ;;  %4187 = vmatpush1.msra.mxu0 %v7320_v48  ;;  %v5621_v58 = vpack.c.bf16 %v3956_v19, %v3952_v18  ;;  %v5690_v35 = vadd.f32 %v3924_v29, %v768_v40 }
 0x240   : > { %v3959_v1 = vmax.f32 %v5689_v8, 0.0 }
 0x241   : > { %v3928_v9 = vpop.f32.mrb[6].mxu1  ;;  %5622 = vmatprep.subr.bf16.mxu1 %v5621_v58  ;;  %v3960_v42 = vmax.f32 %v5690_v35, 0.0 }
 0x242   : > { %5558 = vmatmul.mubr.msk.f32.gmra.mrb[12].mxu0 %vm3986_vm9, %v3967_v14  ;;  %v5691_v51 = vadd.f32 %v3928_v9, %v773_v60  ;;  %v3930_v22 = vpop.f32.mrb[7].mxu1  ;;  %5624 = vmatpush1.bf16.msra.mxu1 %v5623_v2 }
 0x243   : > { %4246 = vmatprep.mubr.f32.mxu0 %v5993_v24  ;;  %v5692_v39 = vadd.f32 %v3930_v22, %v773_v60 }
 0x244   : > { %v3963_v48 = vmax.f32 %v5691_v51, 0.0 }
 0x245   : > { %v3964_v6 = vmax.f32 %v5692_v39, 0.0  ;;  %v4567_v39 = vpop.permute.xlu1 %4566 }
 0x246   : > { %v5627_v23 = vpack.c.bf16 %v3963_v48, %v3959_v1 }
 0x247   : > { %v5625_v46 = vpack.c.bf16 %v3964_v6, %v3960_v42  ;;  %v4572_v42 = vpop.permute.xlu0 %4571 }
 0x249   : > { %5626 = vmatprep.subr.bf16.mxu1 %v5625_v46 }
 0x24a   : > { %5628 = vmatpush1.bf16.msra.mxu1 %v5627_v23 }
 0x24b   : > { %5634 = vmatprep.subr.bf16.mxu1 %v7325_v62  ;;  %v4166_v62 = vld [vmem:[%s7607_s12] sm:$0xff] }
 0x24c   : > { %5562 = vmatmul.mubr.msk.f32.vlgmr.msra.gmra.mrb[14].mxu0 %vm3742_vm15, %v4166_v62 }
 0x24d   : > { %5559 = vmatmul.mubr.msk.f32.vlgmr.msra.gmra.mrb[8].mxu1 %vm3986_vm9, %v3965_v21  ;;  %4252 = vmatprep.mubr.f32.mxu0 %v5993_v24 }
 0x24e   : > { %4149 = vmatprep.mubr.f32.mxu1 %v5993_v24  ;;  %5636 = vmatpush1.bf16.msra.mxu1 %v7359_v20  ;;  %v4167_v20 = vld [vmem:[%s7607_s12 + $0x8] sm:$0xff] }
 0x24f   : > { %4275 = vmatprep.subr.mxu1 %v7363_v0  ;;  %v4168_v0 = vld [vmem:[%s7607_s12 + $0x10] sm:$0xff] }
 0x250   : > { %5563 = vmatmul.mubr.msk.f32.gmra.mrb[16].mxu0 %vm3742_vm15, %v4167_v20 }
 0x251   : > { %5560 = vmatmul.mubr.msk.f32.gmra.mrb[10].mxu1 %vm3986_vm9, %v3966_v41  ;;  %4258 = vmatprep.mubr.f32.mxu0 %v5993_v24 }
 0x252   : > { %4155 = vmatprep.mubr.f32.mxu1 %v5993_v24  ;;  %4276 = vmatpush1.msra.mxu1 %v7374_v30  ;;  %v4169_v30 = vld [vmem:[%s7607_s12 + $0x18] sm:$0xff] }
 0x254   : > { %5564 = vmatmul.mubr.msk.f32.gmra.mrb[18].mxu0 %vm3742_vm15, %v4168_v0 }
 0x255   : > { %5561 = vmatmul.mubr.msk.f32.gmra.mrb[12].mxu1 %vm3986_vm9, %v3967_v14  ;;  %4264 = vmatprep.mubr.f32.mxu0 %v5993_v24 }
 0x256   : > { %4335 = vmatprep.mubr.f32.mxu1 %v5993_v24 }
 0x258   : > { %5565 = vmatmul.mubr.msk.f32.gmra.mrb[20].mxu0 %vm3742_vm15, %v4169_v30 }
 0x259   : > { %5566 = vmatmul.mubr.msk.f32.vlgmr.msra.gmra.mrb[14].mxu1 %vm3742_vm15, %v4166_v62  ;;  %4436 = vmatprep.mubr.f32.mxu0 %v5993_v24 }
 0x25a   : > { %4341 = vmatprep.mubr.f32.mxu1 %v5993_v24 }
 0x25d   : > { %5567 = vmatmul.mubr.msk.f32.gmra.mrb[16].mxu1 %vm3742_vm15, %v4167_v20 }
 0x25e   : > { %4347 = vmatprep.mubr.f32.mxu1 %v5993_v24 }
 0x261   : > { %5568 = vmatmul.mubr.msk.f32.gmra.mrb[18].mxu1 %vm3742_vm15, %v4168_v0 }
 0x262   : > { %4353 = vmatprep.mubr.f32.mxu1 %v5993_v24 }
 0x265   : > { %5569 = vmatmul.mubr.msk.f32.gmra.mrb[20].mxu1 %vm3742_vm15, %v4169_v30 }
 0x266   : > { %4525 = vmatprep.mubr.f32.mxu1 %v5993_v24 }
 0x30d   : > { %v4062_v56 = vpop.f32.mrb[8].mxu0 }
 0x30e   : > { %v4064_v61 = vpop.f32.mrb[9].mxu0  ;;  %v4063_v40 = vadd.f32 %v4062_v56, %v3974_v13 }
 0x30f   : > { %v4065_v10 = vadd.f32 %v4064_v61, %v3974_v13 }
 0x311   : > { %v4068_v44 = vpop.f32.mrb[10].mxu0 }
 0x312   : > { %v4069_v17 = vadd.f32 %v4068_v44, %v3979_v36  ;;  %v4070_v7 = vpop.f32.mrb[11].mxu0  ;;  %v4606_v44 = vld [vmem:[%s7609_s14] sm:$0xff] }
 0x313   : > { %v4071_v52 = vadd.f32 %v4070_v7, %v3979_v36 }
 0x314   : > { %v5639_v47 = vpack.c.bf16 %v4069_v17, %v4063_v40 }
 0x315   : > { %v5637_v31 = vpack.c.bf16 %v4071_v52, %v4065_v10  ;;  %v4074_v54 = vpop.f32.mrb[12].mxu0  ;;  %v4607_v10 = vld [vmem:[%s7609_s14 + $0x8] sm:$0xff] }
 0x316   : > { %v4076_v4 = vpop.f32.mrb[13].mxu0  ;;  %v4075_v60 = vadd.f32 %v4074_v54, %v3984_v12 }
 0x317   : > { %v4077_v53 = vadd.f32 %v4076_v4, %v3984_v12  ;;  %5638 = vmatprep.subr.bf16.mxu0 %v5637_v31 }
 0x318   : > { %5640 = vmatpush1.bf16.msra.mxu0 %v5639_v47 }
 0x319   : > { %4376 = vmatprep.subr.mxu0 %v4077_v53 }
 0x31c   : > { %4377 = vmatpush1.msra.mxu0 %v4075_v60  ;;  %v4608_v60 = vld [vmem:[%s7609_s14 + $0x10] sm:$0xff] }
 0x31d   : > { %5570 = vmatmul.mubr.msk.f32.vlgmr.msra.gmra.mrb[14].mxu0 %vm3742_vm15, %v4162_v28 }
 0x31e   : > { %4442 = vmatprep.mubr.f32.mxu0 %v5993_v24 }
 0x320   : > { %v4145_v34 = vpop.f32.mrb[8].mxu1 }
 0x321   : > { %5571 = vmatmul.mubr.msk.f32.gmra.mrb[16].mxu0 %vm3742_vm15, %v4163_v38  ;;  %v4147_v27 = vpop.f32.mrb[9].mxu1  ;;  %v4146_v25 = vadd.f32 %v4145_v34, %v3974_v13 }
 0x322   : > { %4448 = vmatprep.mubr.f32.mxu0 %v5993_v24  ;;  %v4148_v55 = vadd.f32 %v4147_v27, %v3974_v13 }
 0x324   : > { %v4151_v16 = vpop.f32.mrb[10].mxu1 }
 0x325   : > { %5572 = vmatmul.mubr.msk.f32.gmra.mrb[18].mxu0 %vm3742_vm15, %v4164_v3  ;;  %v4152_v5 = vadd.f32 %v4151_v16, %v3979_v36  ;;  %v4153_v26 = vpop.f32.mrb[11].mxu1 }
 0x326   : > { %4454 = vmatprep.mubr.f32.mxu0 %v5993_v24  ;;  %v4154_v21 = vadd.f32 %v4153_v26, %v3979_v36 }
 0x327   : > { %v5643_v59 = vpack.c.bf16 %v4152_v5, %v4146_v25 }
 0x328   : > { %v5641_v63 = vpack.c.bf16 %v4154_v21, %v4148_v55  ;;  %v4157_v43 = vpop.f32.mrb[12].mxu1 }
 0x329   : > { %5573 = vmatmul.mubr.msk.f32.gmra.mrb[20].mxu0 %vm3742_vm15, %v4165_v11  ;;  %v4159_v41 = vpop.f32.mrb[13].mxu1  ;;  %v4158_v49 = vadd.f32 %v4157_v43, %v3984_v12 }
 0x32a   : > { %4700 = vmatprep.mubr.f32.mxu0 %v5993_v24  ;;  %v4160_v50 = vadd.f32 %v4159_v41, %v3984_v12  ;;  %5642 = vmatprep.subr.bf16.mxu1 %v5641_v63 }
 0x32b   : > { %5644 = vmatpush1.bf16.msra.mxu1 %v5643_v59 }
 0x32c   : > { %4465 = vmatprep.subr.mxu1 %v4160_v50 }
 0x32f   : > { %4466 = vmatpush1.msra.mxu1 %v4158_v49 }
 0x330   : > { %5574 = vmatmul.mubr.msk.f32.vlgmr.msra.gmra.mrb[14].mxu1 %vm3742_vm15, %v4162_v28 }
 0x331   : > { %4531 = vmatprep.mubr.f32.mxu1 %v5993_v24 }
 0x334   : > { %5575 = vmatmul.mubr.msk.f32.gmra.mrb[16].mxu1 %vm3742_vm15, %v4163_v38 }
 0x335   : > { %4537 = vmatprep.mubr.f32.mxu1 %v5993_v24 }
 0x338   : > { %5576 = vmatmul.mubr.msk.f32.gmra.mrb[18].mxu1 %vm3742_vm15, %v4164_v3 }
 0x339   : > { %4543 = vmatprep.mubr.f32.mxu1 %v5993_v24 }
 0x33c   : > { %5577 = vmatmul.mubr.msk.f32.gmra.mrb[20].mxu1 %vm3742_vm15, %v4165_v11 }
 0x33d   : > { %4783 = vmatprep.mubr.f32.mxu1 %v5993_v24 }
 0x3f0   : > { %v4438_v33 = vpop.f32.mrb[14].mxu0 }
 0x3f1   : > { %v4440_v15 = vpop.f32.mrb[15].mxu0  ;;  %v4574_v32 = vadd.f32 %v4557_v45, %v4438_v33  ;;  %v744_v33 = vld [vmem:[%s6229_s0 + $0xa8] sm:$0x7] }
 0x3f2   : > { %v4575_v14 = vadd.f32 %v4557_v45, %v4440_v15  ;;  %v746_v15 = vld [vmem:[%s6229_s0 + $0xb8] sm:$0x7] }
 0x3f3   : > { %v4590_v29 = vmax.f32 %v4574_v32, 0.0  ;;  %v745_v32 = vld [vmem:[%s6229_s0 + $0xb0] sm:$0x7] }
 0x3f4   : > { %v4444_v18 = vpop.f32.mrb[16].mxu0  ;;  %v4591_v8 = vmax.f32 %v4575_v14, 0.0  ;;  %v4805_v14 = vld [vmem:[%s7612_s17 + $0x8] sm:$0xff] }
 0x3f5   : > { %v4578_v19 = vadd.f32 %v4562_v37, %v4444_v18  ;;  %v4446_v57 = vpop.f32.mrb[17].mxu0 }
 0x3f6   : > { %v4579_v2 = vadd.f32 %v4562_v37, %v4446_v57  ;;  %v4615_v57 = vpop.permute.xlu1 %4614 }
 0x3f7   : > { %v4594_v58 = vmax.f32 %v4578_v19, 0.0 }
 0x3f8   : > { %v4595_v35 = vmax.f32 %v4579_v2, 0.0  ;;  %v4450_v9 = vpop.f32.mrb[18].mxu0  ;;  %v4620_v2 = vpop.permute.xlu0 %4619 }
 0x3f9   : > { %v5647_v51 = vpack.c.bf16 %v4594_v58, %v4590_v29  ;;  %v4452_v22 = vpop.f32.mrb[19].mxu0  ;;  %v4582_v48 = vadd.f32 %v4567_v39, %v4450_v9 }
 0x3fa   : > { %v5645_v1 = vpack.c.bf16 %v4595_v35, %v4591_v8  ;;  %v4583_v6 = vadd.f32 %v4567_v39, %v4452_v22 }
 0x3fb   : > { %v4598_v0 = vmax.f32 %v4582_v48, 0.0  ;;  %v4625_v48 = vpop.permute.xlu1 %4624 }
 0x3fc   : > { %v4456_v23 = vpop.f32.mrb[20].mxu0  ;;  %5646 = vmatprep.subr.bf16.mxu0 %v5645_v1  ;;  %v4599_v56 = vmax.f32 %v4583_v6, 0.0 }
 0x3fd   : > { %v4586_v46 = vadd.f32 %v4572_v42, %v4456_v23  ;;  %v4458_v62 = vpop.f32.mrb[21].mxu0  ;;  %5648 = vmatpush1.bf16.msra.mxu0 %v5647_v51 }
 0x3fe   : > { %v4587_v20 = vadd.f32 %v4572_v42, %v4458_v62  ;;  %v4803_v62 = vld [vmem:[%s7611_s16 + $0x8] sm:$0xff] }
 0x3ff   : > { %v4602_v30 = vmax.f32 %v4586_v46, 0.0  ;;  %v4802_v46 = vld [vmem:[%s7611_s16] sm:$0xff] }
 0x400   : > { %v4603_v61 = vmax.f32 %v4587_v20, 0.0 }
 0x401   : > { %v5651_v13 = vpack.c.bf16 %v4602_v30, %v4598_v0 }
 0x402   : > { %v5649_v36 = vpack.c.bf16 %v4603_v61, %v4599_v56 }
 0x403   : > { %v4527_v40 = vpop.f32.mrb[14].mxu1 }
 0x404   : > { %5650 = vmatprep.subr.bf16.mxu0 %v5649_v36  ;;  %v4529_v17 = vpop.f32.mrb[15].mxu1  ;;  %v4576_v7 = vadd.f32 %v4557_v45, %v4527_v40 }
 0x405   : > { %5652 = vmatpush1.bf16.msra.mxu0 %v5651_v13  ;;  %v4577_v52 = vadd.f32 %v4557_v45, %v4529_v17  ;;  %v743_v45 = vld [vmem:[%s6229_s0 + $0xa0] sm:$0x7]  ;;  %s720_s0 = scalar_lea.vmem [#allocation3], %s5415_s3  ;;  %s5330_s3 = scalar_lea.sflag [#allocation4], %s6221_s28 }
 0x406   : > { %v4592_v4 = vmax.f32 %v4576_v7, 0.0  ;;  %5584 = vmatprep.subr.msk.mxu0 %vm788_vm0, %v744_v33  ;;  %s5344_s4 = sshll.u32 %s720_s0, 4  ;;  %s7553_s4 = int_to_ptr.vmem [resolvable:$true] %s5344_s4 }
 0x407   : > { %v4533_v47 = vpop.f32.mrb[16].mxu1  ;;  %v4593_v28 = vmax.f32 %v4577_v52, 0.0  ;;  %s5929_s7 = scalar_lea.vmem %s7553_s4, 256  ;;  %p5936_p2 = scmp.lt.s32.totalorder %s7553_s4, %s5934_s8 }
 0x408   : > { %5578 = vmatmul.mubr.msk.f32.vlgmr.msra.gmra.mrb[22].mxu0 %vm3986_vm9, %v4606_v44  ;;  %v4580_v31 = vadd.f32 %v4562_v37, %v4533_v47  ;;  %v4535_v54 = vpop.f32.mrb[17].mxu1  ;;  %p5930_p13 = scmp.ne.s32.totalorder %s7553_s4, %s5929_s7  ;;  %p5937_p3 = scmp.lt.s32.totalorder %s5935_s9, %s5929_s7 }
 0x409   : > { %4706 = vmatprep.mubr.f32.mxu0 %v5993_v24  ;;  %v4581_v12 = vadd.f32 %v4562_v37, %v4535_v54  ;;  %5585 = vmatpush1.msk.msra.mxu0 %vm788_vm0, %v743_v45  ;;  %v4804_v37 = vld [vmem:[%s7612_s17] sm:$0xff] }
 0x40a   : > { %v4596_v53 = vmax.f32 %v4580_v31, 0.0  ;;  %p5931_p0 = pnand %p5930_p13, %p6150_p6  ;;  %p5938_p4 = por %p5937_p3, %p5936_p2 }
 0x40b   : > { %v4597_v38 = vmax.f32 %v4581_v12, 0.0  ;;  %v4539_v3 = vpop.f32.mrb[18].mxu1  ;;  %v5143_v12 = vpop.permute.xlu0 %5142 }
 0x40c   : > { %5579 = vmatmul.mubr.msk.f32.gmra.mrb[24].mxu0 %vm3986_vm9, %v4607_v10  ;;  %v5655_v34 = vpack.c.bf16 %v4596_v53, %v4592_v4  ;;  %v4541_v27 = vpop.f32.mrb[19].mxu1  ;;  %v4584_v16 = vadd.f32 %v4567_v39, %v4539_v3  ;;  %v5148_v53 = vpop.permute.xlu1 %5147  ;;  %p5932_p1 = pneg %p5931_p0 }
 0x40d   : > { %4712 = vmatprep.mubr.f32.mxu0 %v5993_v24  ;;  %v5653_v11 = vpack.c.bf16 %v4597_v38, %v4593_v28  ;;  %v4585_v25 = vadd.f32 %v4567_v39, %v4541_v27 }
 0x40e   : > { %v4600_v59 = vmax.f32 %v4584_v16, 0.0  ;;  %p5939_p5 = pnand %p5938_p4, %p5932_p1 }
 0x40f   : > { %v4545_v5 = vpop.f32.mrb[20].mxu1  ;;  %5654 = vmatprep.subr.bf16.mxu1 %v5653_v11  ;;  %v4601_v43 = vmax.f32 %v4585_v25, 0.0 }
 0x410   : > { %5580 = vmatmul.mubr.msk.f32.gmra.mrb[26].mxu0 %vm3986_vm9, %v4608_v60  ;;  %v4588_v26 = vadd.f32 %v4572_v42, %v4545_v5  ;;  %v4547_v55 = vpop.f32.mrb[21].mxu1  ;;  %5656 = vmatpush1.bf16.msra.mxu1 %v5655_v34 }
 0x411   : > { %4888 = vmatprep.mubr.f32.mxu0 %v5993_v24  ;;  %v4589_v21 = vadd.f32 %v4572_v42, %v4547_v55 }
 0x412   : > { %v4604_v63 = vmax.f32 %v4588_v26, 0.0 }
 0x413   : > { %v4605_v41 = vmax.f32 %v4589_v21, 0.0 }
 0x414   : > { %v5659_v50 = vpack.c.bf16 %v4604_v63, %v4600_v59  ;;  %5586 = vmatmul.mubr.msk.f32.vlgmr.msra.gmra.mrb[28].mxu0 %vm775_vm1, %v4804_v37 }
 0x415   : > { %v5657_v49 = vpack.c.bf16 %v4605_v41, %v4601_v43  ;;  %4894 = vmatprep.mubr.f32.mxu0 %v5993_v24 }
 0x417   : > { %5658 = vmatprep.subr.bf16.mxu1 %v5657_v49 }
 0x418   : > { %5660 = vmatpush1.bf16.msra.mxu1 %v5659_v50  ;;  %5587 = vmatmul.mubr.msk.f32.gmra.mrb[30].mxu0 %vm775_vm1, %v4805_v14 }
 0x419   : > { %5588 = vmatprep.subr.msk.mxu1 %vm788_vm0, %v746_v15  ;;  %5048 = vmatprep.mubr.f32.mxu0 %v5993_v24 }
 0x41b   : > { %5581 = vmatmul.mubr.msk.f32.vlgmr.msra.gmra.mrb[22].mxu1 %vm3986_vm9, %v4606_v44 }
 0x41c   : > { %4789 = vmatprep.mubr.f32.mxu1 %v5993_v24  ;;  %5589 = vmatpush1.msk.msra.mxu1 %vm788_vm0, %v745_v32  ;;  %vm5173_vm0 = vcmask 130048  }
 0x41f   : > { %5582 = vmatmul.mubr.msk.f32.gmra.mrb[24].mxu1 %vm3986_vm9, %v4607_v10 }
 0x420   : > { %4795 = vmatprep.mubr.f32.mxu1 %v5993_v24 }
 0x423   : > { %5583 = vmatmul.mubr.msk.f32.gmra.mrb[26].mxu1 %vm3986_vm9, %v4608_v60 }
 0x424   : > { %4965 = vmatprep.mubr.f32.mxu1 %v5993_v24 }
 0x427   : > { %5590 = vmatmul.mubr.msk.f32.vlgmr.msra.gmra.mrb[28].mxu1 %vm775_vm1, %v4804_v37 }
 0x428   : > { %4971 = vmatprep.mubr.f32.mxu1 %v5993_v24 }
 0x42b   : > { %5591 = vmatmul.mubr.msk.f32.gmra.mrb[30].mxu1 %vm775_vm1, %v4805_v14 }
 0x42c   : > { %5125 = vmatprep.mubr.f32.mxu1 %v5993_v24 }
 0x4db   : > { %v4702_v18 = vpop.f32.mrb[22].mxu0 }
 0x4dc   : > { %v4704_v19 = vpop.f32.mrb[23].mxu0  ;;  %v4703_v58 = vadd.f32 %v4702_v18, %v4615_v57  ;;  %v5171_v18 = vpop.permute.xlu0 %5170 }
 0x4dd   : > { %v4705_v9 = vadd.f32 %v4704_v19, %v4615_v57 }
 0x4df   : > { %v4708_v29 = vpop.f32.mrb[24].mxu0 }
 0x4e0   : > { %v4709_v8 = vadd.f32 %v4708_v29, %v4620_v2  ;;  %v4710_v35 = vpop.f32.mrb[25].mxu0 }
 0x4e1   : > { %v4711_v51 = vadd.f32 %v4710_v35, %v4620_v2 }
 0x4e2   : > { %v5663_v22 = vpack.c.bf16 %v4709_v8, %v4703_v58 }
 0x4e3   : > { %v5661_v39 = vpack.c.bf16 %v4711_v51, %v4705_v9  ;;  %v4714_v1 = vpop.f32.mrb[26].mxu0 }
 0x4e4   : > { %v4716_v42 = vpop.f32.mrb[27].mxu0  ;;  %v4715_v23 = vadd.f32 %v4714_v1, %v4625_v48 }
 0x4e5   : > { %v4717_v6 = vadd.f32 %v4716_v42, %v4625_v48  ;;  %5662 = vmatprep.subr.bf16.mxu0 %v5661_v39 }
 0x4e6   : > { %5664 = vmatpush1.bf16.msra.mxu0 %v5663_v22 }
 0x4e7   : > { %4988 = vmatprep.subr.mxu0 %v4717_v6 }
 0x4ea   : > { %4989 = vmatpush1.msra.mxu0 %v4715_v23 }
 0x4eb   : > { %5592 = vmatmul.mubr.msk.f32.vlgmr.msra.gmra.mrb[28].mxu0 %vm3742_vm15, %v4802_v46 }
 0x4ec   : > { %5054 = vmatprep.mubr.f32.mxu0 %v5993_v24 }
 0x4ee   : > { %v4785_v20 = vpop.f32.mrb[22].mxu1 }
 0x4ef   : > { %5593 = vmatmul.mubr.msk.f32.gmra.mrb[30].mxu0 %vm3742_vm15, %v4803_v62  ;;  %v4787_v0 = vpop.f32.mrb[23].mxu1  ;;  %v4786_v56 = vadd.f32 %v4785_v20, %v4615_v57 }
 0x4f0   : > { %5241 = vmatprep.mubr.f32.mxu0 %v5993_v24  ;;  %v4788_v36 = vadd.f32 %v4787_v0, %v4615_v57 }
 0x4f2   : > { %v4791_v30 = vpop.f32.mrb[24].mxu1 }
 0x4f3   : > { %v4792_v61 = vadd.f32 %v4791_v30, %v4620_v2  ;;  %v4793_v13 = vpop.f32.mrb[25].mxu1 }
 0x4f4   : > { %v4794_v44 = vadd.f32 %v4793_v13, %v4620_v2 }
 0x4f5   : > { %v5667_v40 = vpack.c.bf16 %v4792_v61, %v4786_v56 }
 0x4f6   : > { %v5665_v17 = vpack.c.bf16 %v4794_v44, %v4788_v36  ;;  %v4797_v7 = vpop.f32.mrb[26].mxu1 }
 0x4f7   : > { %v4799_v10 = vpop.f32.mrb[27].mxu1  ;;  %v4798_v47 = vadd.f32 %v4797_v7, %v4625_v48 }
 0x4f8   : > { %v4800_v52 = vadd.f32 %v4799_v10, %v4625_v48  ;;  %5666 = vmatprep.subr.bf16.mxu1 %v5665_v17 }
 0x4f9   : > { %5668 = vmatpush1.bf16.msra.mxu1 %v5667_v40 }
 0x4fa   : > { %5065 = vmatprep.subr.mxu1 %v4800_v52 }
 0x4fd   : > { %5066 = vmatpush1.msra.mxu1 %v4798_v47 }
 0x4fe   : > { %5594 = vmatmul.mubr.msk.f32.vlgmr.msra.gmra.mrb[28].mxu1 %vm3742_vm15, %v4802_v46 }
 0x4ff   : > { %5131 = vmatprep.mubr.f32.mxu1 %v5993_v24 }
 0x502   : > { %5595 = vmatmul.mubr.msk.f32.gmra.mrb[30].mxu1 %vm3742_vm15, %v4803_v62 }
 0x503   : > { %5312 = vmatprep.mubr.f32.mxu1 %v5993_v24  ;;  %v5166_v24 = vld [vmem:[%s7614_s19] sm:$0x7] }
 0x5be   : > { %v5050_v31 = vpop.f32.mrb[28].mxu0 }
 0x5bf   : > { %v5052_v54 = vpop.f32.mrb[29].mxu0  ;;  %v5150_v4 = vadd.f32 %v5143_v12, %v5050_v31 }
 0x5c0   : > { %v5151_v60 = vadd.f32 %v5143_v12, %v5052_v54 }
 0x5c1   : > { %v5158_v27 = vmax.f32 %v5150_v4, 0.0 }
 0x5c2   : > { %v5056_v28 = vpop.f32.mrb[30].mxu0  ;;  %v5159_v16 = vmax.f32 %v5151_v60, 0.0 }
 0x5c3   : > { %v5154_v38 = vadd.f32 %v5148_v53, %v5056_v28  ;;  %v5058_v3 = vpop.f32.mrb[31].mxu0 }
 0x5c4   : > { %v5155_v34 = vadd.f32 %v5148_v53, %v5058_v3 }
 0x5c5   : > { %v5162_v11 = vmax.f32 %v5154_v38, 0.0 }
 0x5c6   : > { %v5163_v25 = vmax.f32 %v5155_v34, 0.0 }
 0x5c7   : > { %v5671_v5 = vpack.c.bf16 %v5162_v11, %v5158_v27 }
 0x5c8   : > { %v5669_v26 = vpack.c.bf16 %v5163_v25, %v5159_v16 }
 0x5ca   : > { %5670 = vmatprep.subr.bf16.mxu0 %v5669_v26 }
 0x5cb   : > { %5672 = vmatpush1.bf16.msra.mxu0 %v5671_v5 }
 0x5ce   : > { %5596 = vmatmul.mubr.msk.f32.vlgmr.msra.gmra.mrb[32].mxu0 %vm5173_vm0, %v5166_v24 }
 0x5d1   : > { %v5127_v55 = vpop.f32.mrb[28].mxu1 }
 0x5d2   : > { %v5129_v21 = vpop.f32.mrb[29].mxu1  ;;  %v5152_v59 = vadd.f32 %v5143_v12, %v5127_v55 }
 0x5d3   : > { %v5153_v63 = vadd.f32 %v5143_v12, %v5129_v21 }
 0x5d4   : > { %v5160_v33 = vmax.f32 %v5152_v59, 0.0 }
 0x5d5   : > { %v5133_v43 = vpop.f32.mrb[30].mxu1  ;;  %v5161_v45 = vmax.f32 %v5153_v63, 0.0 }
 0x5d6   : > { %v5156_v41 = vadd.f32 %v5148_v53, %v5133_v43  ;;  %v5135_v50 = vpop.f32.mrb[31].mxu1 }
 0x5d7   : > { %v5157_v49 = vadd.f32 %v5148_v53, %v5135_v50 }
 0x5d8   : > { %v5164_v15 = vmax.f32 %v5156_v41, 0.0 }
 0x5d9   : > { %v5165_v32 = vmax.f32 %v5157_v49, 0.0 }
 0x5da   : > { %v5675_v37 = vpack.c.bf16 %v5164_v15, %v5160_v33 }
 0x5db   : > { %v5673_v14 = vpack.c.bf16 %v5165_v32, %v5161_v45 }
 0x5dd   : > { %5674 = vmatprep.subr.bf16.mxu1 %v5673_v14 }
 0x5de   : > { %5676 = vmatpush1.bf16.msra.mxu1 %v5675_v37 }
 0x5e1   : > { %5597 = vmatmul.mubr.msk.f32.vlgmr.msra.gmra.mrb[32].mxu1 %vm5173_vm0, %v5166_v24 }
 0x6a1   : > { %v5243_v19 = vpop.f32.mrb[32].mxu0 }
 0x6a2   : > { %v5244_v57 = vadd.f32 %v5243_v19, %v5171_v18  ;;  %v5245_v2 = vpop.f32.mrb[33].mxu0 }
 0x6a3   : > { %v5246_v29 = vadd.f32 %v5245_v2, %v5171_v18 }
 0x6a5   : > { %v5323_v58 = vcombine.low %v5244_v57, %v5246_v29 }
 0x6a7   : > { %5327 = vst [vmem:[%s720_s0] sm:$0x77] %v5323_v58 }
 0x6b4   : > { %v5314_v8 = vpop.f32.mrb[32].mxu1 }
 0x6b5   : > { %v5315_v35 = vadd.f32 %v5314_v8, %v5171_v18  ;;  %v5316_v9 = vpop.f32.mrb[33].mxu1 }
 0x6b6   : > { %v5317_v51 = vadd.f32 %v5316_v9, %v5171_v18 }
 0x6b8   : > { %v5324_v22 = vcombine.low %v5315_v35, %v5317_v51 }
 0x6ba   : > { %5328 = vst [vmem:[%s720_s0 + $0x8] sm:$0x77] %v5324_v22 }
 0x6bb   : > { %5942 = shalt.err (!%p5939_p5)
}
 0x6bc   : > { %s5943_s28 = scalar_lea.hbm %s7551_s6, 256  ;;  %s5947_s10 = scalar_lea.hbm %s7616_s21, 512 }
 0x6bd   : > { %p5944_p7 = scmp.ne.s32.totalorder %s7551_s6, %s5943_s28  ;;  %p5948_p12 = scmp.lt.u32.totalorder %s7551_s6, %s7616_s21 }
 0x6be   : > { %p5949_p13 = scmp.lt.u32.totalorder %s5947_s10, %s5943_s28  ;;  %p5951_p1 = scmp.lt.u32.totalorder %s5943_s28, %s7551_s6 }
 0x6bf   : > { %p5945_p10 = pnand %p5944_p7, %p6150_p6 }
 0x6c0   : > { %p5950_p0 = por %p5949_p13, %p5948_p12 }
 0x6c1   : > { %p5946_p11 = pneg %p5945_p10 }
 0x6c2   : > { %p5952_p2 = por %p5951_p1, %p5950_p0 }
 0x6c4   : > { %p5953_p3 = pnand %p5952_p2, %p5946_p11 }
 0x6c6   : > { %5956 = shalt.err (!%p5953_p3)
}
 0x6c7   : > { %5847 = dma.vmem_to_hbm [thread:$0]  (%p6150_p6), %s7553_s4, 256, %s7551_s6, %s5330_s3  }
 0x6c8 PF: > { %s5356_s7 = sand.u32 1, %s5979_s2   ;;  %p5850_p4 = pnand %p5411_p9, %p6154_p8 }
 0x6c9   : > { %s5357_s9 = scalar_lea.sflag [#allocation4], %s5356_s7 }
 0x6ca   : > { %5974 = dma.done.wait (!%p5850_p4), %s5357_s9, 256  }
 0x6cb   : > { %5976 = vsyncadd (!%p5850_p4), %s5357_s9, 4294967040  ;;  %s7667_s1 = sld [smem:[#allocation6_spill]]  ;;  %p31_p5 = scmp.ge.s32.totalorder %s6135_s29, 4  }
 0x6cc   : > { %s7668_s2 = smov %s5983_s25  ;;  %s7669_s25 = smov %s5987_s26 }
 0x6cd   : > { %s7671_s27 = smov %s6135_s29  ;;  %33 = sbr.rel (!%p31_p5) target bundleno = 15 (0xf), region = 167 }
 0x6d1   : > { %s7670_s26 = smov %s7667_s1 }
 0x6d4   :  { %5362 = vsyncpa [#allocation4], 1 }
 0x6d5   :  { %5364 = vsyncpa [#allocation4 + $0x1], 1 }

</bundles_post_ra>
